<compile_context>
chip_gen: v7x
topology: tpu7x:2x2x1
jax: 0.10.0
libtpu: 0.0.40
codegen_flags: <defaults>
</compile_context>

<pallas_src>
import functools

import jax
import jax.numpy as jnp
from jax.experimental import pallas as pl
from jax.experimental.pallas import tpu as pltpu


# ---------------------------------------------------------------------------
# Kernel 1: conv1x1 stack (k -> 64 -> 128 -> 1024) + global max over points.
# Grid: (batch, point_chunks).  Output: per-example channel maxima of the
# conv3 PRE-activation (bias3 + ReLU are deferred; they commute with max).
# ---------------------------------------------------------------------------
def tnet_conv_kernel(x_ref, w1_ref, b1_ref, w2_ref, b2_ref, w3_ref,
                     g_ref, m_acc, *, n_chunk):
    n = pl.program_id(1)

    @pl.when(n == 0)
    def _init():
        m_acc[...] = jnp.full(m_acc.shape, -jnp.inf, dtype=m_acc.dtype)

    xb = x_ref[0].astype(jnp.bfloat16)                             # (k, Nc)
    h = jnp.dot(w1_ref[...], xb,
                preferred_element_type=jnp.float32)
    h = jnp.maximum(h + b1_ref[...], 0.0).astype(jnp.bfloat16)     # (64, Nc)
    h = jnp.dot(w2_ref[...], h,
                preferred_element_type=jnp.float32)
    h = jnp.maximum(h + b2_ref[...], 0.0).astype(jnp.bfloat16)     # (128, Nc)
    h = jnp.dot(w3_ref[...], h,
                preferred_element_type=jnp.float32)                # (1024, Nc)

    # Running elementwise max over 128-lane groups (VPU only; free filler
    # under the MXU-bound conv stack).  No per-chunk cross-lane reduce.
    m = m_acc[...]
    for gi in range(n_chunk // 128):
        m = jnp.maximum(m, h[:, gi * 128:(gi + 1) * 128])
    m_acc[...] = m

    @pl.when(n == pl.num_programs(1) - 1)
    def _finish():
        # One cross-lane reduce per example.
        g_ref[0] = jnp.max(m_acc[...], axis=1, keepdims=True)      # (1024, 1)


# ---------------------------------------------------------------------------
# Kernel 2: deferred conv3 bias + ReLU, then the FC stack (1024->512->256->k*k)
# + identity, lane-dense (batch on sublanes, features on lanes), whole batch
# in a single invocation.
# ---------------------------------------------------------------------------
def tnet_fc_kernel(g_ref, b3_ref, wf1_ref, bf1_ref, wf2_ref, bf2_ref,
                   wf3_ref, bf3_ref, iden_ref, out_ref):
    g = jnp.maximum(g_ref[...] + b3_ref[...], 0.0).astype(jnp.bfloat16)   # (B,1024)
    f = jnp.dot(g, wf1_ref[...],
                preferred_element_type=jnp.float32) + bf1_ref[...]
    f = jnp.maximum(f, 0.0).astype(jnp.bfloat16)                          # (B,512)
    f = jnp.dot(f, wf2_ref[...],
                preferred_element_type=jnp.float32) + bf2_ref[...]
    f = jnp.maximum(f, 0.0).astype(jnp.bfloat16)                          # (B,256)
    f = jnp.dot(f, wf3_ref[...],
                preferred_element_type=jnp.float32) + bf3_ref[...]
    out_ref[...] = f + iden_ref[...]                                      # (B,k*k)


def _round_up(x, m):
    return (x + m - 1) // m * m


def _pick_point_tiling(n, cap=2048):
    """Return (n_chunk, n_padded): chunk is a multiple of 128 (<= cap) and
    n_padded is the smallest multiple of n_chunk >= n with minimal padding."""
    n128 = _round_up(n, 128)
    if n128 <= cap:
        return n128, n128
    best_c, best_pad = None, None
    c = cap
    while c >= 1024:
        padded = _round_up(n, c)
        if best_pad is None or padded < best_pad:
            best_c, best_pad = c, padded
        c -= 128
    return best_c, best_pad


def tnet_forward(x_nkw, params, k):
    """x_nkw: (B, k, N) float32, native PyTorch NCW layout."""
    B, k_in, N = x_nkw.shape
    assert k_in == k

    (w1, b1, w2, b2, w3, b3, wf1, bf1, wf2, bf2, wf3, bf3) = params

    # Conv weights (C_out, C_in) in bf16 (halves weight DMA); biases f32.
    w1b, w2b, w3b = (w.astype(jnp.bfloat16) for w in (w1, w2, w3))
    # FC weights transposed to (in, out) bf16 -> lane-dense FC matmuls.
    wf1t, wf2t, wf3t = (w.T.astype(jnp.bfloat16) for w in (wf1, wf2, wf3))
    b3r, bf1r, bf2r, bf3r = (bv.reshape(1, -1) for bv in (b3, bf1, bf2, bf3))
    iden = jnp.eye(k, dtype=jnp.float32).reshape(1, k * k)

    # Pad the points axis by replicating the last REAL point column (edge
    # mode) so the global max is unaffected.
    n_chunk, n_pad = _pick_point_tiling(N)
    if n_pad != N:
        x_nkw = jnp.pad(x_nkw, ((0, 0), (0, 0), (0, n_pad - N)), mode="edge")
    nn = n_pad // n_chunk

    full = lambda arr: pl.BlockSpec(arr.shape, lambda b, n: (0,) * arr.ndim)

    conv_flops = 2 * B * n_pad * (k * 64 + 64 * 128 + 128 * 1024)
    conv_bytes = int(B * k * n_pad * 4
                     + sum(w.size for w in (w1b, w2b, w3b)) * 2
                     + (b1.size + b2.size) * 4
                     + B * 1024 * 4)

    g_pre = pl.pallas_call(
        functools.partial(tnet_conv_kernel, n_chunk=n_chunk),
        out_shape=jax.ShapeDtypeStruct((B, 1024, 1), jnp.float32),
        grid_spec=pltpu.PrefetchScalarGridSpec(
            num_scalar_prefetch=0,
            grid=(B, nn),
            in_specs=[
                pl.BlockSpec((1, k, n_chunk), lambda b, n: (b, 0, n)),
                full(w1b), full(b1),
                full(w2b), full(b2),
                full(w3b),
            ],
            out_specs=pl.BlockSpec((1, 1024, 1), lambda b, n: (b, 0, 0)),
            scratch_shapes=[pltpu.VMEM((1024, 128), jnp.float32)],
        ),
        compiler_params=pltpu.CompilerParams(
            dimension_semantics=("parallel", "arbitrary"),
            vmem_limit_bytes=32 * 1024 * 1024,
        ),
        cost_estimate=pl.CostEstimate(
            flops=conv_flops, transcendentals=0, bytes_accessed=conv_bytes),
    )(x_nkw, w1b, b1, w2b, b2, w3b)

    g_pre = g_pre.reshape(B, 1024)   # tiny (B x 1024) relayout

    fcfull = lambda arr: pl.BlockSpec(arr.shape, lambda i: (0,) * arr.ndim)
    out = pl.pallas_call(
        tnet_fc_kernel,
        out_shape=jax.ShapeDtypeStruct((B, k * k), jnp.float32),
        grid_spec=pltpu.PrefetchScalarGridSpec(
            num_scalar_prefetch=0,
            grid=(1,),
            in_specs=[fcfull(g_pre), fcfull(b3r),
                      fcfull(wf1t), fcfull(bf1r),
                      fcfull(wf2t), fcfull(bf2r),
                      fcfull(wf3t), fcfull(bf3r),
                      fcfull(iden)],
            out_specs=pl.BlockSpec((B, k * k), lambda i: (0, 0)),
        ),
        compiler_params=pltpu.CompilerParams(
            dimension_semantics=("arbitrary",)),
    )(g_pre, b3r, wf1t, bf1r, wf2t, bf2r, wf3t, bf3r, iden)

    return out.reshape(B, k, k)


def make_params(key, k):
    """Deterministic synthetic parameters in native PyTorch layouts:
    conv/fc weights as (out_features, in_features), biases as (out, 1)."""
    dims = [(64, k), (128, 64), (1024, 128),          # conv1..conv3 (ks=1)
            (512, 1024), (256, 512), (k * k, 256)]    # fc1..fc3
    params = []
    for (fan_out, fan_in) in dims:
        key, kw, kb = jax.random.split(key, 3)
        scale = 1.0 / jnp.sqrt(jnp.float32(fan_in))
        w = jax.random.uniform(kw, (fan_out, fan_in), jnp.float32, -scale, scale)
        b = jax.random.uniform(kb, (fan_out, 1), jnp.float32, -scale, scale)
        params += [w, b]
    return tuple(params)


def tnet_reference(x_nkw, params, k):
    """Pure-JAX (f32) reference mirroring the PyTorch forward."""
    (w1, b1, w2, b2, w3, b3, wf1, bf1, wf2, bf2, wf3, bf3) = params
    B = x_nkw.shape[0]
    h = jax.nn.relu(jnp.einsum('oc,bcn->bon', w1, x_nkw) + b1[None])
    h = jax.nn.relu(jnp.einsum('oc,bcn->bon', w2, h) + b2[None])
    h = jax.nn.relu(jnp.einsum('oc,bcn->bon', w3, h) + b3[None])
    g = jnp.max(h, axis=2)                                  # (B, 1024)
    f = jax.nn.relu(g @ wf1.T + bf1[:, 0])
    f = jax.nn.relu(f @ wf2.T + bf2[:, 0])
    f = f @ wf3.T + bf3[:, 0]
    f = f + jnp.eye(k, dtype=jnp.float32).reshape(1, k * k)
    return f.reshape(B, k, k)


if __name__ == "__main__":
    K = 4          # point dimension (k in TNet)
    B = 2          # batch
    N = 16         # number of points

    key = jax.random.PRNGKey(0)
    key, kx = jax.random.split(key)
    x = jax.random.normal(kx, (B, K, N), dtype=jnp.float32)  # NCW like PyTorch

    params = make_params(key, K)

    out = tnet_forward(x, params, K)
    out = jax.block_until_ready(out)

    ref = tnet_reference(x, params, K)
    assert out.shape == (B, K, K)
    # bf16 matmuls with f32 accumulation -> slightly looser tolerance vs f32 ref.
    assert jnp.allclose(out, ref, atol=2e-2, rtol=2e-2), \
        float(jnp.max(jnp.abs(out - ref)))

    print("KERNEL_OK")
</pallas_src>

<mosaic_0001>
module attributes {stable_mosaic.version = 11 : i64} {
  func.func @tnet_conv_kernel(%arg0: i32, %arg1: i32, %arg2: memref<1x4x128xf32, #tpu.memory_space<vmem>>, %arg3: memref<64x4xbf16, #tpu.memory_space<vmem>>, %arg4: memref<64x1xf32, #tpu.memory_space<vmem>>, %arg5: memref<128x64xbf16, #tpu.memory_space<vmem>>, %arg6: memref<128x1xf32, #tpu.memory_space<vmem>>, %arg7: memref<1024x128xbf16, #tpu.memory_space<vmem>>, %arg8: memref<1x1024x1xf32, #tpu.memory_space<vmem>>, %arg9: memref<1024x128xf32, #tpu.memory_space<vmem>>) attributes {dimension_semantics = [#tpu.dimension_semantics<parallel>, #tpu.dimension_semantics<arbitrary>], iteration_bounds = array<i64: 2, 1>, scalar_prefetch = 0 : i64, scratch_operands = 1 : i64, tpu.core_type = #tpu.core_type<tc>, window_params = [{transform_indices = @transform_0, window_bounds = array<i64: 1, 4, 128>}, {pipeline_mode = #tpu.pipeline_mode<synchronous>, transform_indices = @transform_1, window_bounds = array<i64: 64, 4>}, {pipeline_mode = #tpu.pipeline_mode<synchronous>, transform_indices = @transform_2, window_bounds = array<i64: 64, 1>}, {pipeline_mode = #tpu.pipeline_mode<synchronous>, transform_indices = @transform_3, window_bounds = array<i64: 128, 64>}, {pipeline_mode = #tpu.pipeline_mode<synchronous>, transform_indices = @transform_4, window_bounds = array<i64: 128, 1>}, {pipeline_mode = #tpu.pipeline_mode<synchronous>, transform_indices = @transform_5, window_bounds = array<i64: 1024, 128>}, {transform_indices = @transform_6, window_bounds = array<i64: 1, 1024, 1>}]} {
    %c0_i32 = arith.constant 0 : i32
    %0 = arith.cmpi eq, %arg1, %c0_i32 : i32
    %1 = arith.extui %0 : i1 to i32
    %c0_i32_0 = arith.constant 0 : i32
    %2 = arith.cmpi ne, %1, %c0_i32_0 : i32
    scf.if %2 {
      %cst_23 = arith.constant 0xFF800000 : f32
      %30 = vector.broadcast %cst_23 : f32 to vector<1024x128xf32>
      %c0_24 = arith.constant 0 : index
      %c0_25 = arith.constant 0 : index
      %31 = vector.load %arg9[%c0_24, %c0_25] : memref<1024x128xf32, #tpu.memory_space<vmem>>, vector<1024x128xf32>
      tpu.vector_store %arg9[%c0_24, %c0_25], %30 {strides = array<i32>} : memref<1024x128xf32, #tpu.memory_space<vmem>>, vector<1024x128xf32>,
    } else {
    }
    %c0 = arith.constant 0 : index
    %c0_1 = arith.constant 0 : index
    %c0_2 = arith.constant 0 : index
    %3 = vector.load %arg2[%c0, %c0_1, %c0_2] : memref<1x4x128xf32, #tpu.memory_space<vmem>>, vector<1x4x128xf32>
    %4 = vector.shape_cast %3 : vector<1x4x128xf32> to vector<4x128xf32>
    %5 = arith.truncf %4 : vector<4x128xf32> to vector<4x128xbf16>
    %c0_3 = arith.constant 0 : index
    %c0_4 = arith.constant 0 : index
    %6 = vector.load %arg3[%c0_3, %c0_4] : memref<64x4xbf16, #tpu.memory_space<vmem>>, vector<64x4xbf16>
    %cst = arith.constant dense<0.000000e+00> : vector<64x128xf32>
    %7 = tpu.matmul %6, %5, %cst {dimension_numbers = #tpu.dot_dimension_numbers<[1], [0], [0], [1], [0, 0, 1, 1], [], []>} : vector<64x4xbf16>, vector<4x128xbf16>, vector<64x128xf32> -> vector<64x128xf32>
    %c0_5 = arith.constant 0 : index
    %c0_6 = arith.constant 0 : index
    %8 = vector.load %arg4[%c0_5, %c0_6] : memref<64x1xf32, #tpu.memory_space<vmem>>, vector<64x1xf32>
    %9 = vector.broadcast %8 : vector<64x1xf32> to vector<64x128xf32>
    %10 = arith.addf %7, %9 : vector<64x128xf32>
    %cst_7 = arith.constant 0.000000e+00 : f32
    %11 = vector.broadcast %cst_7 : f32 to vector<64x128xf32>
    %12 = arith.maximumf %10, %11 : vector<64x128xf32>
    %13 = arith.truncf %12 : vector<64x128xf32> to vector<64x128xbf16>
    %c0_8 = arith.constant 0 : index
    %c0_9 = arith.constant 0 : index
    %14 = vector.load %arg5[%c0_8, %c0_9] : memref<128x64xbf16, #tpu.memory_space<vmem>>, vector<128x64xbf16>
    %cst_10 = arith.constant dense<0.000000e+00> : vector<128x128xf32>
    %15 = tpu.matmul %14, %13, %cst_10 {dimension_numbers = #tpu.dot_dimension_numbers<[1], [0], [0], [1], [0, 0, 1, 1], [], []>} : vector<128x64xbf16>, vector<64x128xbf16>, vector<128x128xf32> -> vector<128x128xf32>
    %c0_11 = arith.constant 0 : index
    %c0_12 = arith.constant 0 : index
    %16 = vector.load %arg6[%c0_11, %c0_12] : memref<128x1xf32, #tpu.memory_space<vmem>>, vector<128x1xf32>
    %17 = vector.broadcast %16 : vector<128x1xf32> to vector<128x128xf32>
    %18 = arith.addf %15, %17 : vector<128x128xf32>
    %cst_13 = arith.constant 0.000000e+00 : f32
    %19 = vector.broadcast %cst_13 : f32 to vector<128x128xf32>
    %20 = arith.maximumf %18, %19 : vector<128x128xf32>
    %21 = arith.truncf %20 : vector<128x128xf32> to vector<128x128xbf16>
    %c0_14 = arith.constant 0 : index
    %c0_15 = arith.constant 0 : index
    %22 = vector.load %arg7[%c0_14, %c0_15] : memref<1024x128xbf16, #tpu.memory_space<vmem>>, vector<1024x128xbf16>
    %cst_16 = arith.constant dense<0.000000e+00> : vector<1024x128xf32>
    %23 = tpu.matmul %22, %21, %cst_16 {dimension_numbers = #tpu.dot_dimension_numbers<[1], [0], [0], [1], [0, 0, 1, 1], [], []>} : vector<1024x128xbf16>, vector<128x128xbf16>, vector<1024x128xf32> -> vector<1024x128xf32>
    %c0_17 = arith.constant 0 : index
    %c0_18 = arith.constant 0 : index
    %24 = vector.load %arg9[%c0_17, %c0_18] : memref<1024x128xf32, #tpu.memory_space<vmem>>, vector<1024x128xf32>
    %25 = arith.maximumf %24, %23 : vector<1024x128xf32>
    %c0_19 = arith.constant 0 : index
    %c0_20 = arith.constant 0 : index
    %26 = vector.load %arg9[%c0_19, %c0_20] : memref<1024x128xf32, #tpu.memory_space<vmem>>, vector<1024x128xf32>
    tpu.vector_store %arg9[%c0_19, %c0_20], %25 {strides = array<i32>} : memref<1024x128xf32, #tpu.memory_space<vmem>>, vector<1024x128xf32>,
    %c0_i32_21 = arith.constant 0 : i32
    %27 = arith.cmpi eq, %arg1, %c0_i32_21 : i32
    %28 = arith.extui %27 : i1 to i32
    %c0_i32_22 = arith.constant 0 : i32
    %29 = arith.cmpi ne, %28, %c0_i32_22 : i32
    scf.if %29 {
      %c0_23 = arith.constant 0 : index
      %c0_24 = arith.constant 0 : index
      %30 = vector.load %arg9[%c0_23, %c0_24] : memref<1024x128xf32, #tpu.memory_space<vmem>>, vector<1024x128xf32>
      %cst_25 = arith.constant dense<0xFF800000> : vector<1024xf32>
      %31 = vector.multi_reduction <maximumf>, %30, %cst_25 [1] : vector<1024x128xf32> to vector<1024xf32>
      %32 = vector.shape_cast %31 : vector<1024xf32> to vector<1024x1xf32>
      %c0_26 = arith.constant 0 : index
      %c0_27 = arith.constant 0 : index
      %c0_28 = arith.constant 0 : index
      %33 = vector.load %arg8[%c0_26, %c0_27, %c0_28] : memref<1x1024x1xf32, #tpu.memory_space<vmem>>, vector<1x1024x1xf32>
      %34 = vector.shape_cast %33 : vector<1x1024x1xf32> to vector<1024x1xf32>
      %35 = vector.shape_cast %32 : vector<1024x1xf32> to vector<1x1024x1xf32>
      tpu.vector_store %arg8[%c0_26, %c0_27, %c0_28], %35 {strides = array<i32>} : memref<1x1024x1xf32, #tpu.memory_space<vmem>>, vector<1x1024x1xf32>,
    } else {
    }
    return
  }
  func.func @transform_0(%arg0: i32, %arg1: i32) -> (i32, i32, i32) {
    %c0_i32 = arith.constant 0 : i32
    %c0_i32_0 = arith.constant 0 : i32
    return %arg0, %c0_i32, %arg1 : i32, i32, i32
  }
  func.func @transform_1(%arg0: i32, %arg1: i32) -> (i32, i32) {
    %c0_i32 = arith.constant 0 : i32
    %c0_i32_0 = arith.constant 0 : i32
    %c0_i32_1 = arith.constant 0 : i32
    return %c0_i32, %c0_i32_0 : i32, i32
  }
  func.func @transform_2(%arg0: i32, %arg1: i32) -> (i32, i32) {
    %c0_i32 = arith.constant 0 : i32
    %c0_i32_0 = arith.constant 0 : i32
    %c0_i32_1 = arith.constant 0 : i32
    return %c0_i32, %c0_i32_0 : i32, i32
  }
  func.func @transform_3(%arg0: i32, %arg1: i32) -> (i32, i32) {
    %c0_i32 = arith.constant 0 : i32
    %c0_i32_0 = arith.constant 0 : i32
    %c0_i32_1 = arith.constant 0 : i32
    return %c0_i32, %c0_i32_0 : i32, i32
  }
  func.func @transform_4(%arg0: i32, %arg1: i32) -> (i32, i32) {
    %c0_i32 = arith.constant 0 : i32
    %c0_i32_0 = arith.constant 0 : i32
    %c0_i32_1 = arith.constant 0 : i32
    return %c0_i32, %c0_i32_0 : i32, i32
  }
  func.func @transform_5(%arg0: i32, %arg1: i32) -> (i32, i32) {
    %c0_i32 = arith.constant 0 : i32
    %c0_i32_0 = arith.constant 0 : i32
    %c0_i32_1 = arith.constant 0 : i32
    return %c0_i32, %c0_i32_0 : i32, i32
  }
  func.func @transform_6(%arg0: i32, %arg1: i32) -> (i32, i32, i32) {
    %c0_i32 = arith.constant 0 : i32
    %c0_i32_0 = arith.constant 0 : i32
    %c0_i32_1 = arith.constant 0 : i32
    return %arg0, %c0_i32, %c0_i32_0 : i32, i32, i32
  }
}

</mosaic_0001>

<bundles_post_ra>
// kernel: tpu_custom_call.1
= control target key start
LH: loop header
LB: loop body
LE: loop exit
PB: predicated region body
PF: predicated region fallthrough
CT: control target
= control target key end

     0   :  { %11 = vsyncpa [#allocation4], 0  ;;  %s3522_s21 = smov 0   ;;  %s3524_s22 = smov 0   ;;  %s4241_s0 = inlined_call_operand.vmem [shape: f32[2,4,128], index: 0, kind: input, shape index: {}]   ;;  %s4242_s1 = inlined_call_operand.vmem [shape: bf16[64,4], index: 1, kind: input, shape index: {}]   ;;  %s4243_s2 = inlined_call_operand.vmem [shape: f32[64,1], index: 2, kind: input, shape index: {}]   ;;  %s4244_s3 = inlined_call_operand.vmem [shape: bf16[128,64], index: 3, kind: input, shape index: {}]   ;;  %s4245_s4 = inlined_call_operand.vmem [shape: f32[128,1], index: 4, kind: input, shape index: {}]   ;;  %s4246_s5 = inlined_call_operand.hbm [shape: bf16[1024,128], index: 5, kind: input, shape index: {}]   ;;  %s4247_s6 = inlined_call_operand.vmem [shape: f32[2,1024,1], index: 6, kind: output, shape index: {}]  }
   0x1   :  { %s3526_s23 = smov 0  }
   0x2 LB: > { %s2926_s24 = sadd.s32 4294967295, %s3481_s23   ;;  %s29_s25 = sadd.s32 1, %s3477_s22  ;;  %s3481_s23 = sphi %s3526_s23, %s17_s23   ;;  %s3477_s22 = sphi %s3524_s22, %s4261_s22   ;;  %s3473_s21 = sphi %s3522_s21, %s4260_s21  }
   0x3   : > { %p31_p0 = scmp.ge.s32.totalorder %s29_s25, 2  ;;  %p2928_p1 = scmp.ge.s32.totalorder %s3481_s23, 1 }
   0x4   : > { %p193_p2 = scmp.lt.s32.totalorder %s3481_s23, 3  ;;  %p3547_p4 = scmp.eq.s32.totalorder %s2926_s24, 0 }
   0x5   : > { %s4263_s25 = smov (%p31_p0, %s29_s25), 0  ;;  %s3483_s28 = smov [#allocation3]  }
   0x6   : > { %p3543_p3 = pnand %p2928_p1, %p193_p2  ;;  %s217_s29 = sshll.u32 %s3483_s28, 4  ;;  %s218_s29 = int_to_ptr.vmem [resolvable:$true] %s217_s29 }
   0x7   : > { %s4252_s27 = scalar_select %p3547_p4, 1, 0 }
   0x8   : > { %s4251_s26 = scalar_select %p3543_p3, 1, 0 }
   0x9   : > { %p3315_p5 = pneg %p3543_p3  ;;  %s3427_s9 = scalar_lea.hbm %s4246_s5, 8192 }
   0xa   : > { %p3428_p7 = scmp.ne.s32.totalorder %s4246_s5, %s3427_s9  ;;  %p3434_p11 = scmp.lt.u32.totalorder %s3427_s9, %s4246_s5 }
   0xb   : > { %p3555_p6 = pnand %p3547_p4, %p3315_p5 }
   0xd   : > { %p3429_p8 = pneg %p3555_p6 }
   0xf   : > { %p3430_p9 = pnand %p3429_p8, %p3428_p7 }
  0x11   : > { %p3431_p10 = pneg %p3430_p9 }
  0x13   : > { %p3436_p12 = pnand %p3434_p11, %p3431_p10 }
  0x15   : > { %3439 = shalt.err (!%p3436_p12)
}
  0x16   : > { %s3440_s14 = scalar_lea.vmem %s218_s29, 8192  ;;  %p3448_p2 = scmp.lt.s32.totalorder %s218_s29, %s218_s29 }
  0x17   : > { %p3441_p13 = scmp.ne.s32.totalorder %s218_s29, %s3440_s14  ;;  %p3449_p5 = scmp.lt.s32.totalorder %s3440_s14, %s3440_s14 }
  0x19   : > { %p3443_p0 = pnand %p3441_p13, %p3429_p8  ;;  %p3450_p4 = por %p3449_p5, %p3448_p2 }
  0x1b   : > { %p3444_p1 = pneg %p3443_p0 }
  0x1d   : > { %p3451_p3 = pnand %p3450_p4, %p3444_p1 }
  0x1f   : > { %3454 = shalt.err (!%p3451_p3)
}
  0x20   : > { %s3484_s15 = smov 64   ;;  %s3485_s16 = smov 4  }
  0x21   : > { %3318 = dma.hbm_to_vmem [thread:$0]  (!%p3555_p6), %s4246_s5, 8192, %s218_s29, [#allocation4], %s3484_s15, %s3484_s15, %s3485_s16  }
  0x22   : > { %p4254_p7 = scmp.ne.s32.totalorder %s4251_s26, 0 }
  0x24   : > { %243 = sbr.rel (%p4254_p7) target bundleno = 1159 (0x487), region = 44 }
  0x2b   : > { %p4255_p9 = scmp.ne.s32.totalorder %s4252_s27, 0 }
  0x2d   : > { %3468 = dma.done.wait (%p4255_p9), [#allocation4], 8192  }
  0x2e   : > { %3470 = vsyncadd (%p4255_p9), [#allocation4], 4294959104  ;;  %p275_p3 = scmp.lt.s32.totalorder %s3473_s21, 1  ;;  %v3486_v0 = vmov 0   ;;  %vm511_vm0 = vcmask 1041408   ;;  %vm498_vm1 = vcmask 31744  }
  0x2f   : > { %3349 = vset.pattern.permute.xlu0 %v3486_v0  ;;  %3350 = vset.pattern.permute.xlu1 %v3486_v0  ;;  %v3351_v3 = vld [vmem:[%s4242_s1] sm:$0xff]   ;;  %v3352_v5 = vld [vmem:[%s4242_s1 + $0x8] sm:$0xff]   ;;  %v3353_v6 = vld [vmem:[%s4242_s1 + $0x10] sm:$0xff]   ;;  %vm744_vm2 = vcmask 523264   ;;  %vm2718_vm3 = vcmask 7168  }
  0x30   : > { %s4265_s21 = smov (!%p275_p3, %s3473_s21), 1  ;;  %3118 = vmatprep.mubr.msk.bf16.mxu0 %vm498_vm1, %v3351_v3  ;;  %v430_v7 = vld [vmem:[%s4243_s2] sm:$0xff]  ;;  %v432_v8 = vld [vmem:[%s4243_s2 + $0x10] sm:$0xff]  ;;  %v431_v9 = vld [vmem:[%s4243_s2 + $0x8] sm:$0xff] }
  0x31   : > { %s2933_s19 = sshll.u32 %s4265_s21, 2  ;;  %440 = vperm.xlu0 %3349, %v430_v7   ;;  %450 = vperm.xlu1 %3350, %v432_v8   ;;  %v433_v10 = vld [vmem:[%s4243_s2 + $0x18] sm:$0xff]  ;;  %v434_v11 = vld [vmem:[%s4243_s2 + $0x20] sm:$0xff]  ;;  %v435_v12 = vld [vmem:[%s4243_s2 + $0x28] sm:$0xff]  ;;  %s3026_s15 = sshll.u32 %s4265_s21, 10 }
  0x32   : > { %s281_s26 = scalar_lea.vmem %s4241_s0, %s2933_s19  ;;  %v3354_v13 = vld [vmem:[%s4242_s1 + $0x18] sm:$0xff]   ;;  %v436_v14 = vld [vmem:[%s4243_s2 + $0x30] sm:$0xff]  ;;  %v608_v16 = vld [vmem:[%s4245_s4] sm:$0xff]  ;;  %s3916_s18 = scalar_lea.vmem %s4247_s6, %s3026_s15 }
  0x33   : > { %v420_v1 = vld [vmem:[%s281_s26] sm:$0xf]  ;;  %v437_v15 = vld [vmem:[%s4243_s2 + $0x38] sm:$0xff]  ;;  %v609_v17 = vld [vmem:[%s4245_s4 + $0x8] sm:$0xff] }
  0x34   : > { %v421_v2 = vpack.c.bf16 %v420_v1, %v420_v1  ;;  %v610_v18 = vld [vmem:[%s4245_s4 + $0x10] sm:$0xff]  ;;  %v611_v19 = vld [vmem:[%s4245_s4 + $0x18] sm:$0xff]  ;;  %v612_v20 = vld [vmem:[%s4245_s4 + $0x20] sm:$0xff] }
  0x35   : > { %445 = vperm.xlu0 %3349, %v431_v9   ;;  %455 = vperm.xlu1 %3350, %v433_v10   ;;  %v613_v21 = vld [vmem:[%s4245_s4 + $0x28] sm:$0xff]  ;;  %v614_v22 = vld [vmem:[%s4245_s4 + $0x30] sm:$0xff]  ;;  %v615_v23 = vld [vmem:[%s4245_s4 + $0x38] sm:$0xff] }
  0x36   : > { %3310 = vmatprep.subr.msk.bf16.mxu0 %vm511_vm0, %v421_v2  ;;  %v513_v4 = vsel %vm511_vm0, %v421_v2, 0  ;;  %v616_v24 = vld [vmem:[%s4245_s4 + $0x40] sm:$0xff]  ;;  %v617_v25 = vld [vmem:[%s4245_s4 + $0x48] sm:$0xff]  ;;  %v618_v26 = vld [vmem:[%s4245_s4 + $0x50] sm:$0xff] }
  0x37   : > { %3117 = vmatpush3.bf16.msra.mxu0 %v513_v4  ;;  %v619_v27 = vld [vmem:[%s4245_s4 + $0x58] sm:$0xff]  ;;  %v620_v28 = vld [vmem:[%s4245_s4 + $0x60] sm:$0xff]  ;;  %v621_v29 = vld [vmem:[%s4245_s4 + $0x68] sm:$0xff] }
  0x38   : > { %v622_v30 = vld [vmem:[%s4245_s4 + $0x70] sm:$0xff]  ;;  %v623_v31 = vld [vmem:[%s4245_s4 + $0x78] sm:$0xff]  ;;  %v3355_v32 = vld [vmem:[%s4244_s3] sm:$0xff]  }
  0x39   : > { %460 = vperm.xlu0 %3349, %v434_v11   ;;  %465 = vperm.xlu1 %3350, %v435_v12   ;;  %v3358_v7 = vld [vmem:[%s4244_s3 + $0x18] sm:$0xff]   ;;  %v3359_v8 = vld [vmem:[%s4244_s3 + $0x20] sm:$0xff]   ;;  %v3360_v9 = vld [vmem:[%s4244_s3 + $0x28] sm:$0xff]  }
  0x3a   : > { %3119 = vmatmul.mubr.msk.bf16.vlgmr.msra.gmra.mrb[0].mxu0 %vm498_vm1, %v3352_v5  ;;  %3134 = vmatprep.mubr.msk.bf16.mxu1 %vm744_vm2, %v3355_v32  ;;  %v3356_v5 = vld [vmem:[%s4244_s3 + $0x8] sm:$0xff]   ;;  %v3361_v10 = vld [vmem:[%s4244_s3 + $0x30] sm:$0xff]   ;;  %v3362_v11 = vld [vmem:[%s4244_s3 + $0x38] sm:$0xff]  }
  0x3b   : > { %3122 = vmatprep.mubr.msk.bf16.mxu0 %vm498_vm1, %v3353_v6  ;;  %v3357_v6 = vld [vmem:[%s4244_s3 + $0x10] sm:$0xff]   ;;  %v3363_v12 = vld [vmem:[#allocation3] sm:$0xff]  }
  0x3d   : > { %470 = vperm.xlu0 %3349, %v436_v14   ;;  %475 = vperm.xlu1 %3350, %v437_v15  }
  0x41   : > { %626 = vperm.xlu0 %3349, %v608_v16   ;;  %631 = vperm.xlu1 %3350, %v609_v17  }
  0x42   : > { %3123 = vmatmul.mubr.msk.bf16.gmra.mrb[4].mxu0 %vm498_vm1, %v3354_v13  ;;  %v3364_v13 = vld [vmem:[#allocation3 + $0x110] sm:$0xff]  }
  0x43   : > { %3166 = vmatprep.mubr.bf16.mxu0 %v3363_v12 }
  0x45   : > { %636 = vperm.xlu0 %3349, %v610_v18   ;;  %641 = vperm.xlu1 %3350, %v611_v19  }
  0x49   : > { %646 = vperm.xlu0 %3349, %v612_v20   ;;  %651 = vperm.xlu1 %3350, %v613_v21  }
  0x4d   : > { %656 = vperm.xlu0 %3349, %v614_v22   ;;  %661 = vperm.xlu1 %3350, %v615_v23  }
  0x51   : > { %666 = vperm.xlu0 %3349, %v616_v24   ;;  %671 = vperm.xlu1 %3350, %v617_v25  }
  0x55   : > { %676 = vperm.xlu0 %3349, %v618_v26   ;;  %681 = vperm.xlu1 %3350, %v619_v27  }
  0x59   : > { %686 = vperm.xlu0 %3349, %v620_v28   ;;  %691 = vperm.xlu1 %3350, %v621_v29  }
  0x5d   : > { %696 = vperm.xlu0 %3349, %v622_v30   ;;  %701 = vperm.xlu1 %3350, %v623_v31  }
  0xb0   : > { %v441_v33 = vpop.permute.xlu0 %440  ;;  %v451_v34 = vpop.permute.xlu1 %450 }
  0xb4   : > { %v446_v35 = vpop.permute.xlu0 %445  ;;  %v456_v36 = vpop.permute.xlu1 %455 }
  0xb8   : > { %v461_v40 = vpop.permute.xlu0 %460  ;;  %v466_v45 = vpop.permute.xlu1 %465 }
  0xbc   : > { %v471_v52 = vpop.permute.xlu0 %470  ;;  %v476_v57 = vpop.permute.xlu1 %475 }
  0xc0   : > { %v627_v14 = vpop.permute.xlu0 %626  ;;  %v632_v15 = vpop.permute.xlu1 %631 }
  0xc4   : > { %v637_v16 = vpop.permute.xlu0 %636  ;;  %v642_v17 = vpop.permute.xlu1 %641 }
  0xc8   : > { %v647_v18 = vpop.permute.xlu0 %646  ;;  %v652_v19 = vpop.permute.xlu1 %651 }
  0xcc   : > { %v657_v20 = vpop.permute.xlu0 %656  ;;  %v662_v24 = vpop.permute.xlu1 %661 }
  0xd0   : > { %v667_v32 = vpop.permute.xlu0 %666 }
 0x10d   : > { %v3120_v37 = vpop.f32.mrb[0].mxu0 }
 0x10e   : > { %v558_v38 = vadd.f32 %v3120_v37, %v451_v34  ;;  %v549_v39 = vpop.f32.mrb[1].mxu0 }
 0x10f   : > { %v550_v41 = vadd.f32 %v549_v39, %v441_v33  ;;  %v3121_v42 = vpop.f32.mrb[2].mxu0 }
 0x110   : > { %v561_v43 = vadd.f32 %v3121_v42, %v456_v36  ;;  %v552_v44 = vpop.f32.mrb[3].mxu0  ;;  %v582_v47 = vmax.f32 %v558_v38, 0.0  ;;  %v672_v36 = vpop.permute.xlu1 %671 }
 0x111   : > { %v553_v46 = vadd.f32 %v552_v44, %v446_v35  ;;  %v580_v49 = vmax.f32 %v550_v41, 0.0 }
 0x112   : > { %v583_v48 = vmax.f32 %v561_v43, 0.0 }
 0x113   : > { %v581_v50 = vmax.f32 %v553_v46, 0.0 }
 0x114   : > { %v589_v51 = vpack.c.bf16 %v583_v48, %v582_v47 }
 0x115   : > { %v3124_v53 = vpop.f32.mrb[4].mxu0  ;;  %v588_v54 = vpack.c.bf16 %v581_v50, %v580_v49  ;;  %v682_v49 = vpop.permute.xlu1 %681 }
 0x116   : > { %v574_v55 = vadd.f32 %v3124_v53, %v471_v52  ;;  %v565_v56 = vpop.f32.mrb[5].mxu0 }
 0x117   : > { %v566_v58 = vadd.f32 %v565_v56, %v461_v40  ;;  %v3125_v59 = vpop.f32.mrb[6].mxu0  ;;  %3126 = vmatprep.subr.bf16.mxu1 %v588_v54 }
 0x118   : > { %v577_v60 = vadd.f32 %v3125_v59, %v476_v57  ;;  %v568_v61 = vpop.f32.mrb[7].mxu0  ;;  %3127 = vmatpush3.bf16.msra.mxu1 %v588_v54  ;;  %v586_v63 = vmax.f32 %v574_v55, 0.0 }
 0x119   : > { %v569_v62 = vadd.f32 %v568_v61, %v466_v45  ;;  %3128 = vmatprep.subr.bf16.mxu1 %v589_v51  ;;  %v584_v1 = vmax.f32 %v566_v58, 0.0  ;;  %v677_v45 = vpop.permute.xlu0 %676 }
 0x11a   : > { %v587_v0 = vmax.f32 %v577_v60, 0.0 }
 0x11b   : > { %v585_v2 = vmax.f32 %v569_v62, 0.0  ;;  %v692_v62 = vpop.permute.xlu1 %691 }
 0x11c   : > { %v591_v3 = vpack.c.bf16 %v587_v0, %v586_v63  ;;  %3129 = vmatpush3.bf16.msra.mxu1 %v589_v51 }
 0x11d   : > { %v590_v4 = vpack.c.bf16 %v585_v2, %v584_v1  ;;  %v687_v57 = vpop.permute.xlu0 %686 }
 0x11f   : > { %3130 = vmatprep.subr.bf16.mxu1 %v590_v4 }
 0x120   : > { %3131 = vmatpush3.bf16.msra.mxu1 %v590_v4 }
 0x121   : > { %3132 = vmatprep.subr.bf16.mxu1 %v591_v3 }
 0x124   : > { %3133 = vmatpush3.bf16.msra.mxu1 %v591_v3 }
 0x127   : > { %3135 = vmatmul.mubr.msk.bf16.vlgmr.msra.gmra.mrb[0].mxu1 %vm744_vm2, %v3356_v5  ;;  %v697_v5 = vpop.permute.xlu0 %696 }
 0x128   : > { %3138 = vmatprep.mubr.msk.bf16.mxu1 %vm744_vm2, %v3357_v6 }
 0x12f   : > { %3139 = vmatmul.mubr.msk.bf16.gmra.mrb[4].mxu1 %vm744_vm2, %v3358_v7 }
 0x130   : > { %3142 = vmatprep.mubr.msk.bf16.mxu1 %vm744_vm2, %v3359_v8 }
 0x137   : > { %3143 = vmatmul.mubr.msk.bf16.gmra.mrb[8].mxu1 %vm744_vm2, %v3360_v9 }
 0x138   : > { %3146 = vmatprep.mubr.msk.bf16.mxu1 %vm744_vm2, %v3361_v10  ;;  %v702_v10 = vpop.permute.xlu1 %701 }
 0x13f   : > { %3147 = vmatmul.mubr.msk.bf16.gmra.mrb[12].mxu1 %vm744_vm2, %v3362_v11 }
 0x140   : > { %3234 = vmatprep.mubr.bf16.mxu1 %v3364_v13 }
 0x1fa   : > { %v3136_v21 = vpop.f32.mrb[0].mxu1 }
 0x1fb   : > { %v812_v22 = vadd.f32 %v3136_v21, %v637_v16  ;;  %v803_v23 = vpop.f32.mrb[1].mxu1 }
 0x1fc   : > { %v804_v25 = vadd.f32 %v803_v23, %v627_v14  ;;  %v3137_v26 = vpop.f32.mrb[2].mxu1  ;;  %v3366_v23 = vld [vmem:[#allocation3 + $0x118] sm:$0xff]  }
 0x1fd   : > { %v815_v27 = vadd.f32 %v3137_v26, %v642_v17  ;;  %v806_v28 = vpop.f32.mrb[3].mxu1  ;;  %v868_v30 = vmax.f32 %v812_v22, 0.0  ;;  %v3365_v22 = vld [vmem:[#allocation3 + $0x8] sm:$0xff]   ;;  %v3368_v26 = vld [vmem:[#allocation3 + $0x18] sm:$0xff]  }
 0x1fe   : > { %v807_v29 = vadd.f32 %v806_v28, %v632_v15  ;;  %v866_v33 = vmax.f32 %v804_v25, 0.0  ;;  %v3369_v25 = vld [vmem:[#allocation3 + $0x120] sm:$0xff]  }
 0x1ff   : > { %v869_v31 = vmax.f32 %v815_v27, 0.0  ;;  %v3370_v27 = vld [vmem:[#allocation3 + $0x128] sm:$0xff]   ;;  %v3371_v28 = vld [vmem:[#allocation3 + $0x20] sm:$0xff]  }
 0x200   : > { %v867_v34 = vmax.f32 %v807_v29, 0.0  ;;  %v3373_v29 = vld [vmem:[#allocation3 + $0x130] sm:$0xff]  }
 0x201   : > { %v883_v35 = vpack.c.bf16 %v869_v31, %v868_v30  ;;  %v3372_v30 = vld [vmem:[#allocation3 + $0x28] sm:$0xff]   ;;  %v3374_v31 = vld [vmem:[#allocation3 + $0x138] sm:$0xff]  }
 0x202   : > { %v882_v37 = vpack.c.bf16 %v867_v34, %v866_v33  ;;  %v3140_v38 = vpop.f32.mrb[4].mxu1  ;;  %v3377_v33 = vld [vmem:[#allocation3 + $0x140] sm:$0xff]   ;;  %v3376_v34 = vld [vmem:[#allocation3 + $0x38] sm:$0xff]  }
 0x203   : > { %v828_v39 = vadd.f32 %v3140_v38, %v657_v20  ;;  %v819_v40 = vpop.f32.mrb[5].mxu1  ;;  %v3380_v38 = vld [vmem:[#allocation3 + $0x48] sm:$0xff]  }
 0x204   : > { %v820_v41 = vadd.f32 %v819_v40, %v647_v18  ;;  %v3141_v42 = vpop.f32.mrb[6].mxu1  ;;  %3150 = vmatprep.subr.bf16.mxu0 %v882_v37  ;;  %3294 = vmatprep.subr.bf16.mxu1 %v882_v37  ;;  %v3383_v40 = vld [vmem:[#allocation3 + $0x50] sm:$0xff]  }
 0x205   : > { %v831_v43 = vadd.f32 %v3141_v42, %v662_v24  ;;  %v822_v44 = vpop.f32.mrb[7].mxu1  ;;  %3151 = vmatpush3.bf16.msra.mxu0 %v882_v37  ;;  %3302 = vmatpush3.bf16.msra.mxu1 %v882_v37  ;;  %v872_v47 = vmax.f32 %v828_v39, 0.0  ;;  %v3367_v24 = vld [vmem:[#allocation3 + $0x10] sm:$0xff]   ;;  %v3382_v39 = vld [vmem:[#allocation3 + $0x158] sm:$0xff]  }
 0x206   : > { %v823_v46 = vadd.f32 %v822_v44, %v652_v19  ;;  %3152 = vmatprep.subr.bf16.mxu0 %v883_v35  ;;  %3295 = vmatprep.subr.bf16.mxu1 %v883_v35  ;;  %v870_v50 = vmax.f32 %v820_v41, 0.0  ;;  %v3381_v37 = vld [vmem:[#allocation3 + $0x150] sm:$0xff]   ;;  %v3385_v41 = vld [vmem:[#allocation3 + $0x160] sm:$0xff]   ;;  %v3384_v42 = vld [vmem:[#allocation3 + $0x58] sm:$0xff]  }
 0x207   : > { %v873_v48 = vmax.f32 %v831_v43, 0.0  ;;  %v3386_v43 = vld [vmem:[#allocation3 + $0x168] sm:$0xff]   ;;  %v3387_v44 = vld [vmem:[#allocation3 + $0x60] sm:$0xff]  }
 0x208   : > { %v871_v51 = vmax.f32 %v823_v46, 0.0  ;;  %v3388_v46 = vld [vmem:[#allocation3 + $0x68] sm:$0xff]  }
 0x209   : > { %v885_v52 = vpack.c.bf16 %v873_v48, %v872_v47  ;;  %3153 = vmatpush3.bf16.msra.mxu0 %v883_v35  ;;  %3303 = vmatpush3.bf16.msra.mxu1 %v883_v35  ;;  %v3378_v35 = vld [vmem:[#allocation3 + $0x148] sm:$0xff]   ;;  %v3390_v47 = vld [vmem:[#allocation3 + $0x178] sm:$0xff]   ;;  %v3391_v48 = vld [vmem:[#allocation3 + $0x70] sm:$0xff]  }
 0x20a   : > { %v884_v53 = vpack.c.bf16 %v871_v51, %v870_v50  ;;  %v3144_v54 = vpop.f32.mrb[8].mxu1  ;;  %v3392_v50 = vld [vmem:[#allocation3 + $0x78] sm:$0xff]   ;;  %v3394_v51 = vld [vmem:[#allocation3 + $0x188] sm:$0xff]  }
 0x20b   : > { %v844_v55 = vadd.f32 %v3144_v54, %v677_v45  ;;  %v835_v56 = vpop.f32.mrb[9].mxu1  ;;  %v3389_v45 = vld [vmem:[#allocation3 + $0x170] sm:$0xff]   ;;  %v3396_v54 = vld [vmem:[#allocation3 + $0x88] sm:$0xff]  }
 0x20c   : > { %v836_v58 = vadd.f32 %v835_v56, %v667_v32  ;;  %v3145_v59 = vpop.f32.mrb[10].mxu1  ;;  %3154 = vmatprep.subr.bf16.mxu0 %v884_v53  ;;  %3296 = vmatprep.subr.bf16.mxu1 %v884_v53  ;;  %v3375_v32 = vld [vmem:[#allocation3 + $0x30] sm:$0xff]  }
 0x20d   : > { %v847_v60 = vadd.f32 %v3145_v59, %v682_v49  ;;  %v838_v61 = vpop.f32.mrb[11].mxu1  ;;  %3155 = vmatpush3.bf16.msra.mxu0 %v884_v53  ;;  %3304 = vmatpush3.bf16.msra.mxu1 %v884_v53  ;;  %v876_v0 = vmax.f32 %v844_v55, 0.0  ;;  %v3393_v49 = vld [vmem:[#allocation3 + $0x180] sm:$0xff]   ;;  %v3397_v53 = vld [vmem:[#allocation3 + $0x190] sm:$0xff]   ;;  %v3398_v55 = vld [vmem:[#allocation3 + $0x198] sm:$0xff]  }
 0x20e   : > { %v839_v63 = vadd.f32 %v838_v61, %v672_v36  ;;  %3156 = vmatprep.subr.bf16.mxu0 %v885_v52  ;;  %3297 = vmatprep.subr.bf16.mxu1 %v885_v52  ;;  %v874_v2 = vmax.f32 %v836_v58, 0.0  ;;  %v3379_v36 = vld [vmem:[#allocation3 + $0x40] sm:$0xff]   ;;  %v3399_v56 = vld [vmem:[#allocation3 + $0x90] sm:$0xff]   ;;  %v3400_v58 = vld [vmem:[#allocation3 + $0x98] sm:$0xff]  }
 0x20f   : > { %v877_v1 = vmax.f32 %v847_v60, 0.0  ;;  %v3402_v59 = vld [vmem:[#allocation3 + $0x1a8] sm:$0xff]   ;;  %v3403_v60 = vld [vmem:[#allocation3 + $0xa0] sm:$0xff]   ;;  %v3405_v61 = vld [vmem:[#allocation3 + $0x1b0] sm:$0xff]  }
 0x210   : > { %v875_v3 = vmax.f32 %v839_v63, 0.0  ;;  %v3406_v63 = vld [vmem:[#allocation3 + $0x1b8] sm:$0xff]  }
 0x211   : > { %v887_v4 = vpack.c.bf16 %v877_v1, %v876_v0  ;;  %3157 = vmatpush3.bf16.msra.mxu0 %v885_v52  ;;  %3305 = vmatpush3.bf16.msra.mxu1 %v885_v52  ;;  %v3395_v52 = vld [vmem:[#allocation3 + $0x80] sm:$0xff]   ;;  %v3407_v0 = vld [vmem:[#allocation3 + $0xb0] sm:$0xff]  }
 0x212   : > { %v886_v6 = vpack.c.bf16 %v875_v3, %v874_v2  ;;  %v3148_v7 = vpop.f32.mrb[12].mxu1  ;;  %v3409_v1 = vld [vmem:[#allocation3 + $0x1c0] sm:$0xff]   ;;  %v3408_v2 = vld [vmem:[#allocation3 + $0xb8] sm:$0xff]   ;;  %v3410_v3 = vld [vmem:[#allocation3 + $0x1c8] sm:$0xff]  }
 0x213   : > { %v860_v8 = vadd.f32 %v3148_v7, %v697_v5  ;;  %v851_v9 = vpop.f32.mrb[13].mxu1  ;;  %v3413_v5 = vld [vmem:[#allocation3 + $0x1d0] sm:$0xff]   ;;  %v3414_v7 = vld [vmem:[#allocation3 + $0x1d8] sm:$0xff]  }
 0x214   : > { %v852_v11 = vadd.f32 %v851_v9, %v687_v57  ;;  %v3149_v12 = vpop.f32.mrb[14].mxu1  ;;  %3158 = vmatprep.subr.bf16.mxu0 %v886_v6  ;;  %3298 = vmatprep.subr.bf16.mxu1 %v886_v6  ;;  %v3401_v57 = vld [vmem:[#allocation3 + $0x1a0] sm:$0xff]  }
 0x215   : > { %v863_v13 = vadd.f32 %v3149_v12, %v702_v10  ;;  %v854_v14 = vpop.f32.mrb[15].mxu1  ;;  %3159 = vmatpush3.bf16.msra.mxu0 %v886_v6  ;;  %3306 = vmatpush3.bf16.msra.mxu1 %v886_v6  ;;  %v880_v16 = vmax.f32 %v860_v8, 0.0  ;;  %v3412_v6 = vld [vmem:[#allocation3 + $0xc8] sm:$0xff]   ;;  %v3415_v8 = vld [vmem:[#allocation3 + $0xd0] sm:$0xff]   ;;  %v3417_v9 = vld [vmem:[#allocation3 + $0x1e0] sm:$0xff]  }
 0x216   : > { %v855_v15 = vadd.f32 %v854_v14, %v692_v62  ;;  %3160 = vmatprep.subr.bf16.mxu0 %v887_v4  ;;  %3299 = vmatprep.subr.bf16.mxu1 %v887_v4  ;;  %v878_v18 = vmax.f32 %v852_v11, 0.0  ;;  %v3404_v62 = vld [vmem:[#allocation3 + $0xa8] sm:$0xff]   ;;  %v3416_v10 = vld [vmem:[#allocation3 + $0xd8] sm:$0xff]   ;;  %v3419_v12 = vld [vmem:[#allocation3 + $0xe0] sm:$0xff]  }
 0x217   : > { %v881_v17 = vmax.f32 %v863_v13, 0.0  ;;  %v3418_v11 = vld [vmem:[#allocation3 + $0x1e8] sm:$0xff]   ;;  %v3421_v13 = vld [vmem:[#allocation3 + $0x1f0] sm:$0xff]  }
 0x218   : > { %v879_v19 = vmax.f32 %v855_v15, 0.0  ;;  %v3420_v14 = vld [vmem:[#allocation3 + $0xe8] sm:$0xff]   ;;  %v3422_v15 = vld [vmem:[#allocation3 + $0x1f8] sm:$0xff]  }
 0x219   : > { %v889_v20 = vpack.c.bf16 %v881_v17, %v880_v16  ;;  %3161 = vmatpush3.bf16.msra.mxu0 %v887_v4  ;;  %3307 = vmatpush3.bf16.msra.mxu1 %v887_v4  ;;  %v3411_v4 = vld [vmem:[#allocation3 + $0xc0] sm:$0xff]   ;;  %v3423_v16 = vld [vmem:[#allocation3 + $0xf0] sm:$0xff]   ;;  %v3424_v17 = vld [vmem:[#allocation3 + $0xf8] sm:$0xff]  }
 0x21a   : > { %v888_v21 = vpack.c.bf16 %v879_v19, %v878_v18  ;;  %v3425_v18 = vld [vmem:[#allocation3 + $0x100] sm:$0xff]   ;;  %v3426_v19 = vld [vmem:[#allocation3 + $0x108] sm:$0xff]  }
 0x21c   : > { %3162 = vmatprep.subr.bf16.mxu0 %v888_v21  ;;  %3300 = vmatprep.subr.bf16.mxu1 %v888_v21 }
 0x21d   : > { %3163 = vmatpush3.bf16.msra.mxu0 %v888_v21  ;;  %3308 = vmatpush3.bf16.msra.mxu1 %v888_v21 }
 0x21e   : > { %3164 = vmatprep.subr.bf16.mxu0 %v889_v20  ;;  %3301 = vmatprep.subr.bf16.mxu1 %v889_v20 }
 0x221   : > { %3165 = vmatpush3.bf16.msra.mxu0 %v889_v20  ;;  %3309 = vmatpush3.bf16.msra.mxu1 %v889_v20 }
 0x224   : > { %3167 = vmatmul.mubr.bf16.vlgmr.msra.gmra.mrb[8].mxu0 %v3365_v22  ;;  %3235 = vmatmul.mubr.bf16.vlgmr.msra.gmra.mrb[16].mxu1 %v3366_v23 }
 0x225   : > { %3170 = vmatprep.mubr.bf16.mxu0 %v3367_v24  ;;  %3238 = vmatprep.mubr.bf16.mxu1 %v3369_v25 }
 0x22c   : > { %3171 = vmatmul.mubr.bf16.gmra.mrb[12].mxu0 %v3368_v26  ;;  %3239 = vmatmul.mubr.bf16.gmra.mrb[20].mxu1 %v3370_v27 }
 0x22d   : > { %3174 = vmatprep.mubr.bf16.mxu0 %v3371_v28  ;;  %3242 = vmatprep.mubr.bf16.mxu1 %v3373_v29 }
 0x234   : > { %3175 = vmatmul.mubr.bf16.gmra.mrb[16].mxu0 %v3372_v30  ;;  %3243 = vmatmul.mubr.bf16.gmra.mrb[24].mxu1 %v3374_v31 }
 0x235   : > { %3178 = vmatprep.mubr.bf16.mxu0 %v3375_v32  ;;  %3246 = vmatprep.mubr.bf16.mxu1 %v3377_v33 }
 0x23c   : > { %3179 = vmatmul.mubr.bf16.gmra.mrb[20].mxu0 %v3376_v34  ;;  %3247 = vmatmul.mubr.bf16.gmra.mrb[28].mxu1 %v3378_v35 }
 0x23d   : > { %3182 = vmatprep.mubr.bf16.mxu0 %v3379_v36  ;;  %3250 = vmatprep.mubr.bf16.mxu1 %v3381_v37 }
 0x244   : > { %3183 = vmatmul.mubr.bf16.gmra.mrb[24].mxu0 %v3380_v38  ;;  %3251 = vmatmul.mubr.bf16.gmra.mrb[32].mxu1 %v3382_v39 }
 0x245   : > { %3186 = vmatprep.mubr.bf16.mxu0 %v3383_v40  ;;  %3254 = vmatprep.mubr.bf16.mxu1 %v3385_v41 }
 0x24c   : > { %3187 = vmatmul.mubr.bf16.gmra.mrb[28].mxu0 %v3384_v42  ;;  %3255 = vmatmul.mubr.bf16.gmra.mrb[36].mxu1 %v3386_v43 }
 0x24d   : > { %3190 = vmatprep.mubr.bf16.mxu0 %v3387_v44  ;;  %3258 = vmatprep.mubr.bf16.mxu1 %v3389_v45 }
 0x254   : > { %3191 = vmatmul.mubr.bf16.gmra.mrb[32].mxu0 %v3388_v46  ;;  %3259 = vmatmul.mubr.bf16.gmra.mrb[40].mxu1 %v3390_v47 }
 0x255   : > { %3194 = vmatprep.mubr.bf16.mxu0 %v3391_v48  ;;  %3262 = vmatprep.mubr.bf16.mxu1 %v3393_v49 }
 0x25c   : > { %3195 = vmatmul.mubr.bf16.gmra.mrb[36].mxu0 %v3392_v50  ;;  %3263 = vmatmul.mubr.bf16.gmra.mrb[44].mxu1 %v3394_v51 }
 0x25d   : > { %3198 = vmatprep.mubr.bf16.mxu0 %v3395_v52  ;;  %3266 = vmatprep.mubr.bf16.mxu1 %v3397_v53 }
 0x264   : > { %3199 = vmatmul.mubr.bf16.gmra.mrb[40].mxu0 %v3396_v54  ;;  %3267 = vmatmul.mubr.bf16.gmra.mrb[48].mxu1 %v3398_v55 }
 0x265   : > { %3202 = vmatprep.mubr.bf16.mxu0 %v3399_v56  ;;  %3270 = vmatprep.mubr.bf16.mxu1 %v3401_v57 }
 0x26c   : > { %3203 = vmatmul.mubr.bf16.gmra.mrb[44].mxu0 %v3400_v58  ;;  %3271 = vmatmul.mubr.bf16.gmra.mrb[52].mxu1 %v3402_v59 }
 0x26d   : > { %3206 = vmatprep.mubr.bf16.mxu0 %v3403_v60  ;;  %3274 = vmatprep.mubr.bf16.mxu1 %v3405_v61 }
 0x274   : > { %3207 = vmatmul.mubr.bf16.gmra.mrb[48].mxu0 %v3404_v62  ;;  %3275 = vmatmul.mubr.bf16.gmra.mrb[56].mxu1 %v3406_v63 }
 0x275   : > { %3210 = vmatprep.mubr.bf16.mxu0 %v3407_v0  ;;  %3278 = vmatprep.mubr.bf16.mxu1 %v3409_v1 }
 0x27c   : > { %3211 = vmatmul.mubr.bf16.gmra.mrb[52].mxu0 %v3408_v2  ;;  %3279 = vmatmul.mubr.bf16.gmra.mrb[60].mxu1 %v3410_v3 }
 0x27d   : > { %3214 = vmatprep.mubr.bf16.mxu0 %v3411_v4  ;;  %3282 = vmatprep.mubr.bf16.mxu1 %v3413_v5 }
 0x284   : > { %3215 = vmatmul.mubr.bf16.gmra.mrb[56].mxu0 %v3412_v6  ;;  %3283 = vmatmul.mubr.bf16.gmra.mrb[64].mxu1 %v3414_v7 }
 0x285   : > { %3218 = vmatprep.mubr.bf16.mxu0 %v3415_v8  ;;  %3286 = vmatprep.mubr.bf16.mxu1 %v3417_v9 }
 0x28c   : > { %3219 = vmatmul.mubr.bf16.gmra.mrb[60].mxu0 %v3416_v10  ;;  %3287 = vmatmul.mubr.bf16.gmra.mrb[68].mxu1 %v3418_v11 }
 0x28d   : > { %3222 = vmatprep.mubr.bf16.mxu0 %v3419_v12  ;;  %3290 = vmatprep.mubr.bf16.mxu1 %v3421_v13 }
 0x294   : > { %3223 = vmatmul.mubr.bf16.gmra.mrb[64].mxu0 %v3420_v14  ;;  %3291 = vmatmul.mubr.bf16.gmra.mrb[72].mxu1 %v3422_v15 }
 0x295   : > { %3226 = vmatprep.mubr.bf16.mxu0 %v3423_v16 }
 0x29c   : > { %3227 = vmatmul.mubr.bf16.gmra.mrb[68].mxu0 %v3424_v17 }
 0x29d   : > { %3230 = vmatprep.mubr.bf16.mxu0 %v3425_v18 }
 0x2a4   : > { %3231 = vmatmul.mubr.bf16.gmra.mrb[72].mxu0 %v3426_v19 }
 0x2f7   : > { %v3168_v20 = vpop.f32.mrb[8].mxu0  ;;  %v3236_v21 = vpop.f32.mrb[16].mxu1 }
 0x2f8   : > { %2602 = vmax.xlane.f32.xlu1 %v3236_v21  ;;  %2466 = vmax.xlane.f32.xlu0 %v3168_v20  ;;  %v1436_v22 = vpop.f32.mrb[9].mxu0  ;;  %v1708_v23 = vpop.f32.mrb[17].mxu1 }
 0x2f9   : > { %v3169_v24 = vpop.f32.mrb[10].mxu0  ;;  %v3237_v25 = vpop.f32.mrb[18].mxu1 }
 0x2fa   : > { %v1439_v26 = vpop.f32.mrb[11].mxu0  ;;  %v1711_v27 = vpop.f32.mrb[19].mxu1 }
 0x2fc   : > { %2598 = vmax.xlane.f32.xlu1 %v1708_v23  ;;  %2462 = vmax.xlane.f32.xlu0 %v1436_v22 }
 0x2ff   : > { %v3172_v28 = vpop.f32.mrb[12].mxu0  ;;  %v3240_v29 = vpop.f32.mrb[20].mxu1 }
 0x300   : > { %2468 = vmax.xlane.f32.xlu0 %v3169_v24  ;;  %2464 = vmax.xlane.f32.xlu1 %v1439_v26  ;;  %v1452_v30 = vpop.f32.mrb[13].mxu0  ;;  %v1724_v31 = vpop.f32.mrb[21].mxu1 }
 0x301   : > { %v3173_v32 = vpop.f32.mrb[14].mxu0  ;;  %v3241_v33 = vpop.f32.mrb[22].mxu1 }
 0x302   : > { %v1455_v34 = vpop.f32.mrb[15].mxu0  ;;  %v1727_v35 = vpop.f32.mrb[23].mxu1 }
 0x304   : > { %2604 = vmax.xlane.f32.xlu0 %v3237_v25  ;;  %2474 = vmax.xlane.f32.xlu1 %v3172_v28 }
 0x307   : > { %v3176_v36 = vpop.f32.mrb[16].mxu0  ;;  %v3244_v37 = vpop.f32.mrb[24].mxu1 }
 0x308   : > { %2600 = vmax.xlane.f32.xlu0 %v1711_v27  ;;  %2610 = vmax.xlane.f32.xlu1 %v3240_v29  ;;  %v1468_v38 = vpop.f32.mrb[17].mxu0  ;;  %v1740_v39 = vpop.f32.mrb[25].mxu1 }
 0x309   : > { %v3177_v40 = vpop.f32.mrb[18].mxu0  ;;  %v3245_v41 = vpop.f32.mrb[26].mxu1 }
 0x30a   : > { %v1471_v42 = vpop.f32.mrb[19].mxu0  ;;  %v1743_v43 = vpop.f32.mrb[27].mxu1 }
 0x30c   : > { %2470 = vmax.xlane.f32.xlu1 %v1452_v30  ;;  %2476 = vmax.xlane.f32.xlu0 %v3173_v32 }
 0x30f   : > { %v3180_v44 = vpop.f32.mrb[20].mxu0  ;;  %v3248_v45 = vpop.f32.mrb[28].mxu1 }
 0x310   : > { %2606 = vmax.xlane.f32.xlu1 %v1724_v31  ;;  %2612 = vmax.xlane.f32.xlu0 %v3241_v33  ;;  %v1484_v46 = vpop.f32.mrb[21].mxu0  ;;  %v1756_v47 = vpop.f32.mrb[29].mxu1 }
 0x311   : > { %v3181_v48 = vpop.f32.mrb[22].mxu0  ;;  %v3249_v49 = vpop.f32.mrb[30].mxu1 }
 0x312   : > { %v1487_v50 = vpop.f32.mrb[23].mxu0  ;;  %v1759_v51 = vpop.f32.mrb[31].mxu1 }
 0x314   : > { %2472 = vmax.xlane.f32.xlu0 %v1455_v34  ;;  %2482 = vmax.xlane.f32.xlu1 %v3176_v36 }
 0x317   : > { %v3184_v52 = vpop.f32.mrb[24].mxu0  ;;  %v3252_v53 = vpop.f32.mrb[32].mxu1 }
 0x318   : > { %2608 = vmax.xlane.f32.xlu0 %v1727_v35  ;;  %2618 = vmax.xlane.f32.xlu1 %v3244_v37  ;;  %v1500_v54 = vpop.f32.mrb[25].mxu0  ;;  %v1772_v55 = vpop.f32.mrb[33].mxu1 }
 0x319   : > { %v3185_v56 = vpop.f32.mrb[26].mxu0  ;;  %v3253_v57 = vpop.f32.mrb[34].mxu1 }
 0x31a   : > { %v1503_v58 = vpop.f32.mrb[27].mxu0  ;;  %v3709_v59 = vpop.f32.mrb[35].mxu1 }
 0x31c   : > { %2478 = vmax.xlane.f32.xlu1 %v1468_v38  ;;  %2484 = vmax.xlane.f32.xlu0 %v3177_v40 }
 0x31f   : > { %v3188_v60 = vpop.f32.mrb[28].mxu0  ;;  %v3256_v61 = vpop.f32.mrb[36].mxu1 }
 0x320   : > { %2614 = vmax.xlane.f32.xlu1 %v1740_v39  ;;  %2620 = vmax.xlane.f32.xlu0 %v3245_v41  ;;  %v3711_v62 = vpop.f32.mrb[29].mxu0  ;;  %v3713_v63 = vpop.f32.mrb[37].mxu1 }
 0x321   : > { %v3715_v0 = vpop.f32.mrb[30].mxu0  ;;  %v3717_v1 = vpop.f32.mrb[38].mxu1 }
 0x322   : > { %v3719_v2 = vpop.f32.mrb[31].mxu0  ;;  %v3721_v3 = vpop.f32.mrb[39].mxu1 }
 0x324   : > { %2480 = vmax.xlane.f32.xlu0 %v1471_v42  ;;  %2490 = vmax.xlane.f32.xlu1 %v3180_v44 }
 0x327   : > { %v3723_v4 = vpop.f32.mrb[32].mxu0  ;;  %v3725_v5 = vpop.f32.mrb[40].mxu1 }
 0x328   : > { %2616 = vmax.xlane.f32.xlu0 %v1743_v43  ;;  %2626 = vmax.xlane.f32.xlu1 %v3248_v45  ;;  %v3727_v6 = vpop.f32.mrb[33].mxu0  ;;  %v3729_v7 = vpop.f32.mrb[41].mxu1 }
 0x329   : > { %v3731_v8 = vpop.f32.mrb[34].mxu0  ;;  %v3733_v9 = vpop.f32.mrb[42].mxu1 }
 0x32a   : > { %v3735_v10 = vpop.f32.mrb[35].mxu0  ;;  %v3737_v11 = vpop.f32.mrb[43].mxu1 }
 0x32c   : > { %2486 = vmax.xlane.f32.xlu1 %v1484_v46  ;;  %2492 = vmax.xlane.f32.xlu0 %v3181_v48 }
 0x32f   : > { %v3739_v12 = vpop.f32.mrb[36].mxu0  ;;  %v3741_v13 = vpop.f32.mrb[44].mxu1 }
 0x330   : > { %2622 = vmax.xlane.f32.xlu1 %v1756_v47  ;;  %2628 = vmax.xlane.f32.xlu0 %v3249_v49  ;;  %v3743_v14 = vpop.f32.mrb[37].mxu0  ;;  %v3745_v15 = vpop.f32.mrb[45].mxu1 }
 0x331   : > { %v3747_v16 = vpop.f32.mrb[38].mxu0  ;;  %v3749_v17 = vpop.f32.mrb[46].mxu1 }
 0x332   : > { %v3751_v18 = vpop.f32.mrb[39].mxu0  ;;  %v3753_v19 = vpop.f32.mrb[47].mxu1 }
 0x334   : > { %2488 = vmax.xlane.f32.xlu0 %v1487_v50  ;;  %2498 = vmax.xlane.f32.xlu1 %v3184_v52 }
 0x337   : > { %v3755_v20 = vpop.f32.mrb[40].mxu0  ;;  %v3757_v21 = vpop.f32.mrb[48].mxu1 }
 0x338   : > { %2624 = vmax.xlane.f32.xlu0 %v1759_v51  ;;  %2634 = vmax.xlane.f32.xlu1 %v3252_v53  ;;  %v3759_v22 = vpop.f32.mrb[41].mxu0  ;;  %v3761_v23 = vpop.f32.mrb[49].mxu1 }
 0x339   : > { %v3763_v24 = vpop.f32.mrb[42].mxu0  ;;  %v3765_v25 = vpop.f32.mrb[50].mxu1 }
 0x33a   : > { %v3767_v26 = vpop.f32.mrb[43].mxu0  ;;  %v3769_v27 = vpop.f32.mrb[51].mxu1 }
 0x33c   : > { %2494 = vmax.xlane.f32.xlu1 %v1500_v54  ;;  %2500 = vmax.xlane.f32.xlu0 %v3185_v56 }
 0x33f   : > { %v3771_v28 = vpop.f32.mrb[44].mxu0  ;;  %v3773_v29 = vpop.f32.mrb[52].mxu1 }
 0x340   : > { %2630 = vmax.xlane.f32.xlu1 %v1772_v55  ;;  %2636 = vmax.xlane.f32.xlu0 %v3253_v57  ;;  %v3775_v30 = vpop.f32.mrb[45].mxu0  ;;  %v3777_v31 = vpop.f32.mrb[53].mxu1 }
 0x341   : > { %v3779_v32 = vpop.f32.mrb[46].mxu0  ;;  %v3781_v33 = vpop.f32.mrb[54].mxu1 }
 0x342   : > { %v3783_v34 = vpop.f32.mrb[47].mxu0  ;;  %v3785_v35 = vpop.f32.mrb[55].mxu1 }
 0x344   : > { %2496 = vmax.xlane.f32.xlu0 %v1503_v58  ;;  %2506 = vmax.xlane.f32.xlu1 %v3188_v60 }
 0x347   : > { %v3787_v36 = vpop.f32.mrb[48].mxu0  ;;  %v3789_v37 = vpop.f32.mrb[56].mxu1 }
 0x348   : > { %2632 = vmax.xlane.f32.xlu0 %v3709_v59  ;;  %2642 = vmax.xlane.f32.xlu1 %v3256_v61  ;;  %v3792_v38 = vpop.f32.mrb[49].mxu0  ;;  %v3794_v39 = vpop.f32.mrb[57].mxu1 }
 0x349   : > { %v3796_v40 = vpop.f32.mrb[50].mxu0  ;;  %v3798_v41 = vpop.f32.mrb[58].mxu1 }
 0x34a   : > { %v3800_v42 = vpop.f32.mrb[51].mxu0  ;;  %v3802_v43 = vpop.f32.mrb[59].mxu1 }
 0x34c   : > { %2502 = vmax.xlane.f32.xlu1 %v3711_v62  ;;  %2508 = vmax.xlane.f32.xlu0 %v3715_v0 }
 0x34f   : > { %v3806_v44 = vpop.f32.mrb[52].mxu0  ;;  %v3808_v45 = vpop.f32.mrb[60].mxu1 }
 0x350   : > { %2638 = vmax.xlane.f32.xlu1 %v3713_v63  ;;  %2644 = vmax.xlane.f32.xlu0 %v3717_v1  ;;  %v3812_v46 = vpop.f32.mrb[53].mxu0  ;;  %v3814_v47 = vpop.f32.mrb[61].mxu1 }
 0x351   : > { %v3816_v48 = vpop.f32.mrb[54].mxu0  ;;  %v3818_v49 = vpop.f32.mrb[62].mxu1 }
 0x352   : > { %v3820_v50 = vpop.f32.mrb[55].mxu0  ;;  %v3822_v51 = vpop.f32.mrb[63].mxu1 }
 0x354   : > { %2504 = vmax.xlane.f32.xlu0 %v3719_v2  ;;  %2514 = vmax.xlane.f32.xlu1 %v3723_v4 }
 0x357   : > { %v3826_v52 = vpop.f32.mrb[56].mxu0  ;;  %v3828_v53 = vpop.f32.mrb[64].mxu1 }
 0x358   : > { %2640 = vmax.xlane.f32.xlu0 %v3721_v3  ;;  %2650 = vmax.xlane.f32.xlu1 %v3725_v5  ;;  %v3832_v54 = vpop.f32.mrb[57].mxu0  ;;  %v3834_v55 = vpop.f32.mrb[65].mxu1 }
 0x359   : > { %v3836_v56 = vpop.f32.mrb[58].mxu0  ;;  %v3838_v57 = vpop.f32.mrb[66].mxu1 }
 0x35a   : > { %v3840_v58 = vpop.f32.mrb[59].mxu0  ;;  %v3842_v59 = vpop.f32.mrb[67].mxu1 }
 0x35c   : > { %2510 = vmax.xlane.f32.xlu1 %v3727_v6  ;;  %2516 = vmax.xlane.f32.xlu0 %v3731_v8 }
 0x35f   : > { %v3846_v60 = vpop.f32.mrb[60].mxu0  ;;  %v3848_v61 = vpop.f32.mrb[68].mxu1 }
 0x360   : > { %2646 = vmax.xlane.f32.xlu1 %v3729_v7  ;;  %2652 = vmax.xlane.f32.xlu0 %v3733_v9  ;;  %v3852_v62 = vpop.f32.mrb[61].mxu0  ;;  %v3854_v63 = vpop.f32.mrb[69].mxu1 }
 0x361   : > { %v3856_v0 = vpop.f32.mrb[62].mxu0  ;;  %v3858_v1 = vpop.f32.mrb[70].mxu1 }
 0x362   : > { %v3860_v2 = vpop.f32.mrb[63].mxu0  ;;  %v3862_v3 = vpop.f32.mrb[71].mxu1 }
 0x363   : > { %4256 = vst [vmem:[#allocation6_spill] sm:$0xff] %v3862_v3 }
 0x364   : > { %2512 = vmax.xlane.f32.xlu0 %v3735_v10  ;;  %2522 = vmax.xlane.f32.xlu1 %v3739_v12 }
 0x367   : > { %v3866_v4 = vpop.f32.mrb[64].mxu0  ;;  %v3868_v5 = vpop.f32.mrb[72].mxu1 }
 0x368   : > { %2648 = vmax.xlane.f32.xlu0 %v3737_v11  ;;  %2658 = vmax.xlane.f32.xlu1 %v3741_v13  ;;  %v3872_v6 = vpop.f32.mrb[65].mxu0  ;;  %v3874_v7 = vpop.f32.mrb[73].mxu1 }
 0x369   : > { %v3876_v8 = vpop.f32.mrb[66].mxu0  ;;  %v3878_v9 = vpop.f32.mrb[74].mxu1 }
 0x36a   : > { %4257 = vst [vmem:[#allocation7_spill] sm:$0xff] %v3878_v9  ;;  %v3880_v3 = vpop.f32.mrb[67].mxu0  ;;  %v3882_v10 = vpop.f32.mrb[75].mxu1 }
 0x36c   : > { %2518 = vmax.xlane.f32.xlu1 %v3743_v14  ;;  %2524 = vmax.xlane.f32.xlu0 %v3747_v16 }
 0x36f   : > { %v3886_v12 = vpop.f32.mrb[68].mxu0 }
 0x370   : > { %2654 = vmax.xlane.f32.xlu1 %v3745_v15  ;;  %2660 = vmax.xlane.f32.xlu0 %v3749_v17  ;;  %v3890_v11 = vpop.f32.mrb[69].mxu0 }
 0x371   : > { %v3892_v13 = vpop.f32.mrb[70].mxu0 }
 0x372   : > { %v3894_v9 = vpop.f32.mrb[71].mxu0 }
 0x374   : > { %2520 = vmax.xlane.f32.xlu0 %v3751_v18  ;;  %2530 = vmax.xlane.f32.xlu1 %v3755_v20 }
 0x377   : > { %v3898_v14 = vpop.f32.mrb[72].mxu0 }
 0x378   : > { %2656 = vmax.xlane.f32.xlu0 %v3753_v19  ;;  %2666 = vmax.xlane.f32.xlu1 %v3757_v21  ;;  %v3902_v16 = vpop.f32.mrb[73].mxu0 }
 0x379   : > { %v3904_v15 = vpop.f32.mrb[74].mxu0 }
 0x37a   : > { %v3906_v17 = vpop.f32.mrb[75].mxu0 }
 0x37c   : > { %2526 = vmax.xlane.f32.xlu1 %v3759_v22  ;;  %2532 = vmax.xlane.f32.xlu0 %v3763_v24 }
 0x380   : > { %2662 = vmax.xlane.f32.xlu1 %v3761_v23  ;;  %2668 = vmax.xlane.f32.xlu0 %v3765_v25 }
 0x384   : > { %2528 = vmax.xlane.f32.xlu0 %v3767_v26  ;;  %2538 = vmax.xlane.f32.xlu1 %v3771_v28 }
 0x385   : > { %v2603_v18 = vpop.xlane.xlu1 %2602  ;;  %v2467_v19 = vpop.xlane.xlu0 %2466 }
 0x386   : > { %2789 = vst.msk [vmem:[%s3916_s18 + $0x230] sm:$0xff] %vm2718_vm3, %v2603_v18  ;;  %2721 = vst.msk [vmem:[%s3916_s18 + $0x10] sm:$0xff] %vm2718_vm3, %v2467_v19 }
 0x388   : > { %2664 = vmax.xlane.f32.xlu0 %v3769_v27  ;;  %2674 = vmax.xlane.f32.xlu1 %v3773_v29 }
 0x389   : > { %v2599_v20 = vpop.xlane.xlu1 %2598  ;;  %v2463_v21 = vpop.xlane.xlu0 %2462 }
 0x38a   : > { %2787 = vst.msk [vmem:[%s3916_s18 + $0x220] sm:$0xff] %vm2718_vm3, %v2599_v20  ;;  %2719 = vst.msk [vmem:[%s3916_s18] sm:$0xff] %vm2718_vm3, %v2463_v21 }
 0x38c   : > { %2534 = vmax.xlane.f32.xlu1 %v3775_v30  ;;  %2540 = vmax.xlane.f32.xlu0 %v3779_v32 }
 0x38d   : > { %v2469_v22 = vpop.xlane.xlu0 %2468  ;;  %v2465_v23 = vpop.xlane.xlu1 %2464 }
 0x38e   : > { %2722 = vst.msk [vmem:[%s3916_s18 + $0x18] sm:$0xff] %vm2718_vm3, %v2469_v22  ;;  %2720 = vst.msk [vmem:[%s3916_s18 + $0x8] sm:$0xff] %vm2718_vm3, %v2465_v23 }
 0x390   : > { %2670 = vmax.xlane.f32.xlu1 %v3777_v31  ;;  %2676 = vmax.xlane.f32.xlu0 %v3781_v33 }
 0x391   : > { %v2605_v24 = vpop.xlane.xlu0 %2604  ;;  %v2475_v25 = vpop.xlane.xlu1 %2474 }
 0x392   : > { %2790 = vst.msk [vmem:[%s3916_s18 + $0x238] sm:$0xff] %vm2718_vm3, %v2605_v24  ;;  %2725 = vst.msk [vmem:[%s3916_s18 + $0x30] sm:$0xff] %vm2718_vm3, %v2475_v25 }
 0x394   : > { %2536 = vmax.xlane.f32.xlu0 %v3783_v34  ;;  %2546 = vmax.xlane.f32.xlu1 %v3787_v36 }
 0x395   : > { %v2601_v26 = vpop.xlane.xlu0 %2600  ;;  %v2611_v27 = vpop.xlane.xlu1 %2610 }
 0x396   : > { %2788 = vst.msk [vmem:[%s3916_s18 + $0x228] sm:$0xff] %vm2718_vm3, %v2601_v26  ;;  %2793 = vst.msk [vmem:[%s3916_s18 + $0x250] sm:$0xff] %vm2718_vm3, %v2611_v27 }
 0x398   : > { %2672 = vmax.xlane.f32.xlu0 %v3785_v35  ;;  %2682 = vmax.xlane.f32.xlu1 %v3789_v37 }
 0x399   : > { %v2471_v28 = vpop.xlane.xlu1 %2470  ;;  %v2477_v29 = vpop.xlane.xlu0 %2476 }
 0x39a   : > { %2723 = vst.msk [vmem:[%s3916_s18 + $0x20] sm:$0xff] %vm2718_vm3, %v2471_v28  ;;  %2726 = vst.msk [vmem:[%s3916_s18 + $0x38] sm:$0xff] %vm2718_vm3, %v2477_v29 }
 0x39c   : > { %2542 = vmax.xlane.f32.xlu1 %v3792_v38  ;;  %2548 = vmax.xlane.f32.xlu0 %v3796_v40 }
 0x39d   : > { %v2607_v30 = vpop.xlane.xlu1 %2606  ;;  %v2613_v31 = vpop.xlane.xlu0 %2612 }
 0x39e   : > { %2791 = vst.msk [vmem:[%s3916_s18 + $0x240] sm:$0xff] %vm2718_vm3, %v2607_v30  ;;  %2794 = vst.msk [vmem:[%s3916_s18 + $0x258] sm:$0xff] %vm2718_vm3, %v2613_v31 }
 0x3a0   : > { %2678 = vmax.xlane.f32.xlu1 %v3794_v39  ;;  %2684 = vmax.xlane.f32.xlu0 %v3798_v41 }
 0x3a1   : > { %v2473_v32 = vpop.xlane.xlu0 %2472  ;;  %v2483_v33 = vpop.xlane.xlu1 %2482 }
 0x3a2   : > { %2724 = vst.msk [vmem:[%s3916_s18 + $0x28] sm:$0xff] %vm2718_vm3, %v2473_v32  ;;  %2729 = vst.msk [vmem:[%s3916_s18 + $0x50] sm:$0xff] %vm2718_vm3, %v2483_v33 }
 0x3a4   : > { %2544 = vmax.xlane.f32.xlu0 %v3800_v42  ;;  %2554 = vmax.xlane.f32.xlu1 %v3806_v44 }
 0x3a5   : > { %v2609_v34 = vpop.xlane.xlu0 %2608  ;;  %v2619_v35 = vpop.xlane.xlu1 %2618 }
 0x3a6   : > { %2792 = vst.msk [vmem:[%s3916_s18 + $0x248] sm:$0xff] %vm2718_vm3, %v2609_v34  ;;  %2797 = vst.msk [vmem:[%s3916_s18 + $0x270] sm:$0xff] %vm2718_vm3, %v2619_v35 }
 0x3a8   : > { %2680 = vmax.xlane.f32.xlu0 %v3802_v43  ;;  %2690 = vmax.xlane.f32.xlu1 %v3808_v45 }
 0x3a9   : > { %v2479_v36 = vpop.xlane.xlu1 %2478  ;;  %v2485_v37 = vpop.xlane.xlu0 %2484 }
 0x3aa   : > { %2727 = vst.msk [vmem:[%s3916_s18 + $0x40] sm:$0xff] %vm2718_vm3, %v2479_v36  ;;  %2730 = vst.msk [vmem:[%s3916_s18 + $0x58] sm:$0xff] %vm2718_vm3, %v2485_v37 }
 0x3ac   : > { %2550 = vmax.xlane.f32.xlu1 %v3812_v46  ;;  %2556 = vmax.xlane.f32.xlu0 %v3816_v48 }
 0x3ad   : > { %v2615_v38 = vpop.xlane.xlu1 %2614  ;;  %v2621_v39 = vpop.xlane.xlu0 %2620 }
 0x3ae   : > { %2795 = vst.msk [vmem:[%s3916_s18 + $0x260] sm:$0xff] %vm2718_vm3, %v2615_v38  ;;  %2798 = vst.msk [vmem:[%s3916_s18 + $0x278] sm:$0xff] %vm2718_vm3, %v2621_v39 }
 0x3b0   : > { %2686 = vmax.xlane.f32.xlu1 %v3814_v47  ;;  %2692 = vmax.xlane.f32.xlu0 %v3818_v49 }
 0x3b1   : > { %v2481_v40 = vpop.xlane.xlu0 %2480  ;;  %v2491_v41 = vpop.xlane.xlu1 %2490 }
 0x3b2   : > { %2728 = vst.msk [vmem:[%s3916_s18 + $0x48] sm:$0xff] %vm2718_vm3, %v2481_v40  ;;  %2733 = vst.msk [vmem:[%s3916_s18 + $0x70] sm:$0xff] %vm2718_vm3, %v2491_v41 }
 0x3b4   : > { %2552 = vmax.xlane.f32.xlu0 %v3820_v50  ;;  %2562 = vmax.xlane.f32.xlu1 %v3826_v52 }
 0x3b5   : > { %v2617_v42 = vpop.xlane.xlu0 %2616  ;;  %v2627_v43 = vpop.xlane.xlu1 %2626 }
 0x3b6   : > { %2796 = vst.msk [vmem:[%s3916_s18 + $0x268] sm:$0xff] %vm2718_vm3, %v2617_v42  ;;  %2801 = vst.msk [vmem:[%s3916_s18 + $0x290] sm:$0xff] %vm2718_vm3, %v2627_v43 }
 0x3b8   : > { %2688 = vmax.xlane.f32.xlu0 %v3822_v51  ;;  %2698 = vmax.xlane.f32.xlu1 %v3828_v53 }
 0x3b9   : > { %v2487_v44 = vpop.xlane.xlu1 %2486  ;;  %v2493_v45 = vpop.xlane.xlu0 %2492 }
 0x3ba   : > { %2731 = vst.msk [vmem:[%s3916_s18 + $0x60] sm:$0xff] %vm2718_vm3, %v2487_v44  ;;  %2734 = vst.msk [vmem:[%s3916_s18 + $0x78] sm:$0xff] %vm2718_vm3, %v2493_v45 }
 0x3bc   : > { %2558 = vmax.xlane.f32.xlu1 %v3832_v54  ;;  %2564 = vmax.xlane.f32.xlu0 %v3836_v56 }
 0x3bd   : > { %v2623_v46 = vpop.xlane.xlu1 %2622  ;;  %v2629_v47 = vpop.xlane.xlu0 %2628 }
 0x3be   : > { %2799 = vst.msk [vmem:[%s3916_s18 + $0x280] sm:$0xff] %vm2718_vm3, %v2623_v46  ;;  %2802 = vst.msk [vmem:[%s3916_s18 + $0x298] sm:$0xff] %vm2718_vm3, %v2629_v47 }
 0x3c0   : > { %2694 = vmax.xlane.f32.xlu1 %v3834_v55  ;;  %2700 = vmax.xlane.f32.xlu0 %v3838_v57 }
 0x3c1   : > { %v2489_v48 = vpop.xlane.xlu0 %2488  ;;  %v2499_v49 = vpop.xlane.xlu1 %2498 }
 0x3c2   : > { %2732 = vst.msk [vmem:[%s3916_s18 + $0x68] sm:$0xff] %vm2718_vm3, %v2489_v48  ;;  %2737 = vst.msk [vmem:[%s3916_s18 + $0x90] sm:$0xff] %vm2718_vm3, %v2499_v49 }
 0x3c4   : > { %2560 = vmax.xlane.f32.xlu0 %v3840_v58  ;;  %2570 = vmax.xlane.f32.xlu1 %v3846_v60  ;;  %v4258_v60 = vld [vmem:[#allocation6_spill] sm:$0xff] }
 0x3c5   : > { %v2625_v50 = vpop.xlane.xlu0 %2624  ;;  %v2635_v51 = vpop.xlane.xlu1 %2634 }
 0x3c6   : > { %2800 = vst.msk [vmem:[%s3916_s18 + $0x288] sm:$0xff] %vm2718_vm3, %v2625_v50  ;;  %2805 = vst.msk [vmem:[%s3916_s18 + $0x2b0] sm:$0xff] %vm2718_vm3, %v2635_v51 }
 0x3c8   : > { %2696 = vmax.xlane.f32.xlu0 %v3842_v59  ;;  %2706 = vmax.xlane.f32.xlu1 %v3848_v61 }
 0x3c9   : > { %v2495_v52 = vpop.xlane.xlu1 %2494  ;;  %v2501_v53 = vpop.xlane.xlu0 %2500 }
 0x3ca   : > { %2735 = vst.msk [vmem:[%s3916_s18 + $0x80] sm:$0xff] %vm2718_vm3, %v2495_v52  ;;  %2738 = vst.msk [vmem:[%s3916_s18 + $0x98] sm:$0xff] %vm2718_vm3, %v2501_v53 }
 0x3cc   : > { %2566 = vmax.xlane.f32.xlu1 %v3852_v62  ;;  %2572 = vmax.xlane.f32.xlu0 %v3856_v0 }
 0x3cd   : > { %v2631_v54 = vpop.xlane.xlu1 %2630  ;;  %v2637_v55 = vpop.xlane.xlu0 %2636 }
 0x3ce   : > { %2803 = vst.msk [vmem:[%s3916_s18 + $0x2a0] sm:$0xff] %vm2718_vm3, %v2631_v54  ;;  %2806 = vst.msk [vmem:[%s3916_s18 + $0x2b8] sm:$0xff] %vm2718_vm3, %v2637_v55 }
 0x3d0   : > { %2702 = vmax.xlane.f32.xlu1 %v3854_v63  ;;  %2708 = vmax.xlane.f32.xlu0 %v3858_v1 }
 0x3d1   : > { %v2497_v56 = vpop.xlane.xlu0 %2496  ;;  %v2507_v57 = vpop.xlane.xlu1 %2506 }
 0x3d2   : > { %2736 = vst.msk [vmem:[%s3916_s18 + $0x88] sm:$0xff] %vm2718_vm3, %v2497_v56  ;;  %2741 = vst.msk [vmem:[%s3916_s18 + $0xb0] sm:$0xff] %vm2718_vm3, %v2507_v57 }
 0x3d4   : > { %2568 = vmax.xlane.f32.xlu0 %v3860_v2  ;;  %2578 = vmax.xlane.f32.xlu1 %v3866_v4 }
 0x3d5   : > { %v2633_v58 = vpop.xlane.xlu0 %2632  ;;  %v2643_v59 = vpop.xlane.xlu1 %2642 }
 0x3d6   : > { %2804 = vst.msk [vmem:[%s3916_s18 + $0x2a8] sm:$0xff] %vm2718_vm3, %v2633_v58  ;;  %2809 = vst.msk [vmem:[%s3916_s18 + $0x2d0] sm:$0xff] %vm2718_vm3, %v2643_v59 }
 0x3d8   : > { %2704 = vmax.xlane.f32.xlu0 %v4258_v60  ;;  %2574 = vmax.xlane.f32.xlu1 %v3872_v6 }
 0x3d9   : > { %v2503_v61 = vpop.xlane.xlu1 %2502  ;;  %v2509_v62 = vpop.xlane.xlu0 %2508 }
 0x3da   : > { %2739 = vst.msk [vmem:[%s3916_s18 + $0xa0] sm:$0xff] %vm2718_vm3, %v2503_v61  ;;  %2742 = vst.msk [vmem:[%s3916_s18 + $0xb8] sm:$0xff] %vm2718_vm3, %v2509_v62 }
 0x3dc   : > { %2710 = vmax.xlane.f32.xlu1 %v3874_v7  ;;  %2580 = vmax.xlane.f32.xlu0 %v3876_v8 }
 0x3dd   : > { %v2639_v63 = vpop.xlane.xlu1 %2638  ;;  %v2645_v0 = vpop.xlane.xlu0 %2644 }
 0x3de   : > { %2807 = vst.msk [vmem:[%s3916_s18 + $0x2c0] sm:$0xff] %vm2718_vm3, %v2639_v63  ;;  %2810 = vst.msk [vmem:[%s3916_s18 + $0x2d8] sm:$0xff] %vm2718_vm3, %v2645_v0 }
 0x3e0   : > { %2576 = vmax.xlane.f32.xlu0 %v3880_v3  ;;  %2586 = vmax.xlane.f32.xlu1 %v3886_v12 }
 0x3e1   : > { %v2505_v1 = vpop.xlane.xlu0 %2504  ;;  %v2515_v2 = vpop.xlane.xlu1 %2514 }
 0x3e2   : > { %2740 = vst.msk [vmem:[%s3916_s18 + $0xa8] sm:$0xff] %vm2718_vm3, %v2505_v1  ;;  %2745 = vst.msk [vmem:[%s3916_s18 + $0xd0] sm:$0xff] %vm2718_vm3, %v2515_v2 }
 0x3e4   : > { %2712 = vmax.xlane.f32.xlu0 %v3882_v10  ;;  %2582 = vmax.xlane.f32.xlu1 %v3890_v11 }
 0x3e5   : > { %v2641_v4 = vpop.xlane.xlu0 %2640  ;;  %v2651_v6 = vpop.xlane.xlu1 %2650 }
 0x3e6   : > { %2808 = vst.msk [vmem:[%s3916_s18 + $0x2c8] sm:$0xff] %vm2718_vm3, %v2641_v4  ;;  %2813 = vst.msk [vmem:[%s3916_s18 + $0x2f0] sm:$0xff] %vm2718_vm3, %v2651_v6 }
 0x3e8   : > { %2588 = vmax.xlane.f32.xlu0 %v3892_v13  ;;  %2594 = vmax.xlane.f32.xlu1 %v3898_v14 }
 0x3e9   : > { %v2511_v3 = vpop.xlane.xlu1 %2510  ;;  %v2517_v7 = vpop.xlane.xlu0 %2516 }
 0x3ea   : > { %2743 = vst.msk [vmem:[%s3916_s18 + $0xc0] sm:$0xff] %vm2718_vm3, %v2511_v3  ;;  %2746 = vst.msk [vmem:[%s3916_s18 + $0xd8] sm:$0xff] %vm2718_vm3, %v2517_v7 }
 0x3ec   : > { %2584 = vmax.xlane.f32.xlu0 %v3894_v9  ;;  %2590 = vmax.xlane.f32.xlu1 %v3902_v16 }
 0x3ed   : > { %v2647_v8 = vpop.xlane.xlu1 %2646  ;;  %v2653_v10 = vpop.xlane.xlu0 %2652 }
 0x3ee   : > { %2811 = vst.msk [vmem:[%s3916_s18 + $0x2e0] sm:$0xff] %vm2718_vm3, %v2647_v8  ;;  %2814 = vst.msk [vmem:[%s3916_s18 + $0x2f8] sm:$0xff] %vm2718_vm3, %v2653_v10 }
 0x3f0   : > { %2714 = vmax.xlane.f32.xlu1 %v3868_v5  ;;  %2596 = vmax.xlane.f32.xlu0 %v3904_v15  ;;  %v4259_v5 = vld [vmem:[#allocation7_spill] sm:$0xff] }
 0x3f1   : > { %v2513_v12 = vpop.xlane.xlu0 %2512  ;;  %v2523_v11 = vpop.xlane.xlu1 %2522 }
 0x3f2   : > { %2744 = vst.msk [vmem:[%s3916_s18 + $0xc8] sm:$0xff] %vm2718_vm3, %v2513_v12  ;;  %2749 = vst.msk [vmem:[%s3916_s18 + $0xf0] sm:$0xff] %vm2718_vm3, %v2523_v11 }
 0x3f4   : > { %2592 = vmax.xlane.f32.xlu0 %v3906_v17 }
 0x3f5   : > { %v2649_v9 = vpop.xlane.xlu0 %2648  ;;  %v2659_v13 = vpop.xlane.xlu1 %2658 }
 0x3f6   : > { %2812 = vst.msk [vmem:[%s3916_s18 + $0x2e8] sm:$0xff] %vm2718_vm3, %v2649_v9  ;;  %2817 = vst.msk [vmem:[%s3916_s18 + $0x310] sm:$0xff] %vm2718_vm3, %v2659_v13 }
 0x3f8   : > { %2716 = vmax.xlane.f32.xlu0 %v4259_v5 }
 0x3f9   : > { %v2519_v14 = vpop.xlane.xlu1 %2518  ;;  %v2525_v16 = vpop.xlane.xlu0 %2524 }
 0x3fa   : > { %2747 = vst.msk [vmem:[%s3916_s18 + $0xe0] sm:$0xff] %vm2718_vm3, %v2519_v14  ;;  %2750 = vst.msk [vmem:[%s3916_s18 + $0xf8] sm:$0xff] %vm2718_vm3, %v2525_v16 }
 0x3fd   : > { %v2655_v15 = vpop.xlane.xlu1 %2654  ;;  %v2661_v17 = vpop.xlane.xlu0 %2660 }
 0x3fe   : > { %2815 = vst.msk [vmem:[%s3916_s18 + $0x300] sm:$0xff] %vm2718_vm3, %v2655_v15  ;;  %2818 = vst.msk [vmem:[%s3916_s18 + $0x318] sm:$0xff] %vm2718_vm3, %v2661_v17 }
 0x401   : > { %v2521_v18 = vpop.xlane.xlu0 %2520  ;;  %v2531_v19 = vpop.xlane.xlu1 %2530 }
 0x402   : > { %2748 = vst.msk [vmem:[%s3916_s18 + $0xe8] sm:$0xff] %vm2718_vm3, %v2521_v18  ;;  %2753 = vst.msk [vmem:[%s3916_s18 + $0x110] sm:$0xff] %vm2718_vm3, %v2531_v19 }
 0x405   : > { %v2657_v20 = vpop.xlane.xlu0 %2656  ;;  %v2667_v21 = vpop.xlane.xlu1 %2666 }
 0x406   : > { %2816 = vst.msk [vmem:[%s3916_s18 + $0x308] sm:$0xff] %vm2718_vm3, %v2657_v20  ;;  %2821 = vst.msk [vmem:[%s3916_s18 + $0x330] sm:$0xff] %vm2718_vm3, %v2667_v21 }
 0x409   : > { %v2527_v22 = vpop.xlane.xlu1 %2526  ;;  %v2533_v23 = vpop.xlane.xlu0 %2532 }
 0x40a   : > { %2751 = vst.msk [vmem:[%s3916_s18 + $0x100] sm:$0xff] %vm2718_vm3, %v2527_v22  ;;  %2754 = vst.msk [vmem:[%s3916_s18 + $0x118] sm:$0xff] %vm2718_vm3, %v2533_v23 }
 0x40d   : > { %v2663_v24 = vpop.xlane.xlu1 %2662  ;;  %v2669_v25 = vpop.xlane.xlu0 %2668 }
 0x40e   : > { %2819 = vst.msk [vmem:[%s3916_s18 + $0x320] sm:$0xff] %vm2718_vm3, %v2663_v24  ;;  %2822 = vst.msk [vmem:[%s3916_s18 + $0x338] sm:$0xff] %vm2718_vm3, %v2669_v25 }
 0x411   : > { %v2529_v26 = vpop.xlane.xlu0 %2528  ;;  %v2539_v27 = vpop.xlane.xlu1 %2538 }
 0x412   : > { %2752 = vst.msk [vmem:[%s3916_s18 + $0x108] sm:$0xff] %vm2718_vm3, %v2529_v26  ;;  %2757 = vst.msk [vmem:[%s3916_s18 + $0x130] sm:$0xff] %vm2718_vm3, %v2539_v27 }
 0x415   : > { %v2665_v28 = vpop.xlane.xlu0 %2664  ;;  %v2675_v29 = vpop.xlane.xlu1 %2674 }
 0x416   : > { %2820 = vst.msk [vmem:[%s3916_s18 + $0x328] sm:$0xff] %vm2718_vm3, %v2665_v28  ;;  %2825 = vst.msk [vmem:[%s3916_s18 + $0x350] sm:$0xff] %vm2718_vm3, %v2675_v29 }
 0x419   : > { %v2535_v30 = vpop.xlane.xlu1 %2534  ;;  %v2541_v31 = vpop.xlane.xlu0 %2540 }
 0x41a   : > { %2755 = vst.msk [vmem:[%s3916_s18 + $0x120] sm:$0xff] %vm2718_vm3, %v2535_v30  ;;  %2758 = vst.msk [vmem:[%s3916_s18 + $0x138] sm:$0xff] %vm2718_vm3, %v2541_v31 }
 0x41d   : > { %v2671_v32 = vpop.xlane.xlu1 %2670  ;;  %v2677_v33 = vpop.xlane.xlu0 %2676 }
 0x41e   : > { %2823 = vst.msk [vmem:[%s3916_s18 + $0x340] sm:$0xff] %vm2718_vm3, %v2671_v32  ;;  %2826 = vst.msk [vmem:[%s3916_s18 + $0x358] sm:$0xff] %vm2718_vm3, %v2677_v33 }
 0x421   : > { %v2537_v34 = vpop.xlane.xlu0 %2536  ;;  %v2547_v35 = vpop.xlane.xlu1 %2546 }
 0x422   : > { %2756 = vst.msk [vmem:[%s3916_s18 + $0x128] sm:$0xff] %vm2718_vm3, %v2537_v34  ;;  %2761 = vst.msk [vmem:[%s3916_s18 + $0x150] sm:$0xff] %vm2718_vm3, %v2547_v35 }
 0x425   : > { %v2673_v36 = vpop.xlane.xlu0 %2672  ;;  %v2683_v37 = vpop.xlane.xlu1 %2682 }
 0x426   : > { %2824 = vst.msk [vmem:[%s3916_s18 + $0x348] sm:$0xff] %vm2718_vm3, %v2673_v36  ;;  %2829 = vst.msk [vmem:[%s3916_s18 + $0x370] sm:$0xff] %vm2718_vm3, %v2683_v37 }
 0x429   : > { %v2543_v38 = vpop.xlane.xlu1 %2542  ;;  %v2549_v39 = vpop.xlane.xlu0 %2548 }
 0x42a   : > { %2759 = vst.msk [vmem:[%s3916_s18 + $0x140] sm:$0xff] %vm2718_vm3, %v2543_v38  ;;  %2762 = vst.msk [vmem:[%s3916_s18 + $0x158] sm:$0xff] %vm2718_vm3, %v2549_v39 }
 0x42d   : > { %v2679_v40 = vpop.xlane.xlu1 %2678  ;;  %v2685_v41 = vpop.xlane.xlu0 %2684 }
 0x42e   : > { %2827 = vst.msk [vmem:[%s3916_s18 + $0x360] sm:$0xff] %vm2718_vm3, %v2679_v40  ;;  %2830 = vst.msk [vmem:[%s3916_s18 + $0x378] sm:$0xff] %vm2718_vm3, %v2685_v41 }
 0x431   : > { %v2545_v42 = vpop.xlane.xlu0 %2544  ;;  %v2555_v43 = vpop.xlane.xlu1 %2554 }
 0x432   : > { %2760 = vst.msk [vmem:[%s3916_s18 + $0x148] sm:$0xff] %vm2718_vm3, %v2545_v42  ;;  %2765 = vst.msk [vmem:[%s3916_s18 + $0x170] sm:$0xff] %vm2718_vm3, %v2555_v43 }
 0x435   : > { %v2681_v44 = vpop.xlane.xlu0 %2680  ;;  %v2691_v45 = vpop.xlane.xlu1 %2690 }
 0x436   : > { %2828 = vst.msk [vmem:[%s3916_s18 + $0x368] sm:$0xff] %vm2718_vm3, %v2681_v44  ;;  %2833 = vst.msk [vmem:[%s3916_s18 + $0x390] sm:$0xff] %vm2718_vm3, %v2691_v45 }
 0x439   : > { %v2551_v46 = vpop.xlane.xlu1 %2550  ;;  %v2557_v47 = vpop.xlane.xlu0 %2556 }
 0x43a   : > { %2763 = vst.msk [vmem:[%s3916_s18 + $0x160] sm:$0xff] %vm2718_vm3, %v2551_v46  ;;  %2766 = vst.msk [vmem:[%s3916_s18 + $0x178] sm:$0xff] %vm2718_vm3, %v2557_v47 }
 0x43d   : > { %v2687_v48 = vpop.xlane.xlu1 %2686  ;;  %v2693_v49 = vpop.xlane.xlu0 %2692 }
 0x43e   : > { %2831 = vst.msk [vmem:[%s3916_s18 + $0x380] sm:$0xff] %vm2718_vm3, %v2687_v48  ;;  %2834 = vst.msk [vmem:[%s3916_s18 + $0x398] sm:$0xff] %vm2718_vm3, %v2693_v49 }
 0x441   : > { %v2553_v50 = vpop.xlane.xlu0 %2552  ;;  %v2563_v51 = vpop.xlane.xlu1 %2562 }
 0x442   : > { %2764 = vst.msk [vmem:[%s3916_s18 + $0x168] sm:$0xff] %vm2718_vm3, %v2553_v50  ;;  %2769 = vst.msk [vmem:[%s3916_s18 + $0x190] sm:$0xff] %vm2718_vm3, %v2563_v51 }
 0x445   : > { %v2689_v52 = vpop.xlane.xlu0 %2688  ;;  %v2699_v53 = vpop.xlane.xlu1 %2698 }
 0x446   : > { %2832 = vst.msk [vmem:[%s3916_s18 + $0x388] sm:$0xff] %vm2718_vm3, %v2689_v52  ;;  %2837 = vst.msk [vmem:[%s3916_s18 + $0x3b0] sm:$0xff] %vm2718_vm3, %v2699_v53 }
 0x449   : > { %v2559_v54 = vpop.xlane.xlu1 %2558  ;;  %v2565_v55 = vpop.xlane.xlu0 %2564 }
 0x44a   : > { %2767 = vst.msk [vmem:[%s3916_s18 + $0x180] sm:$0xff] %vm2718_vm3, %v2559_v54  ;;  %2770 = vst.msk [vmem:[%s3916_s18 + $0x198] sm:$0xff] %vm2718_vm3, %v2565_v55 }
 0x44d   : > { %v2695_v56 = vpop.xlane.xlu1 %2694  ;;  %v2701_v57 = vpop.xlane.xlu0 %2700 }
 0x44e   : > { %2835 = vst.msk [vmem:[%s3916_s18 + $0x3a0] sm:$0xff] %vm2718_vm3, %v2695_v56  ;;  %2838 = vst.msk [vmem:[%s3916_s18 + $0x3b8] sm:$0xff] %vm2718_vm3, %v2701_v57 }
 0x451   : > { %v2561_v58 = vpop.xlane.xlu0 %2560  ;;  %v2571_v59 = vpop.xlane.xlu1 %2570 }
 0x452   : > { %2768 = vst.msk [vmem:[%s3916_s18 + $0x188] sm:$0xff] %vm2718_vm3, %v2561_v58  ;;  %2773 = vst.msk [vmem:[%s3916_s18 + $0x1b0] sm:$0xff] %vm2718_vm3, %v2571_v59 }
 0x455   : > { %v2697_v60 = vpop.xlane.xlu0 %2696  ;;  %v2707_v61 = vpop.xlane.xlu1 %2706 }
 0x456   : > { %2836 = vst.msk [vmem:[%s3916_s18 + $0x3a8] sm:$0xff] %vm2718_vm3, %v2697_v60  ;;  %2841 = vst.msk [vmem:[%s3916_s18 + $0x3d0] sm:$0xff] %vm2718_vm3, %v2707_v61 }
 0x459   : > { %v2567_v62 = vpop.xlane.xlu1 %2566  ;;  %v2573_v63 = vpop.xlane.xlu0 %2572 }
 0x45a   : > { %2771 = vst.msk [vmem:[%s3916_s18 + $0x1a0] sm:$0xff] %vm2718_vm3, %v2567_v62  ;;  %2774 = vst.msk [vmem:[%s3916_s18 + $0x1b8] sm:$0xff] %vm2718_vm3, %v2573_v63 }
 0x45d   : > { %v2703_v0 = vpop.xlane.xlu1 %2702  ;;  %v2709_v1 = vpop.xlane.xlu0 %2708 }
 0x45e   : > { %2839 = vst.msk [vmem:[%s3916_s18 + $0x3c0] sm:$0xff] %vm2718_vm3, %v2703_v0  ;;  %2842 = vst.msk [vmem:[%s3916_s18 + $0x3d8] sm:$0xff] %vm2718_vm3, %v2709_v1 }
 0x461   : > { %v2569_v2 = vpop.xlane.xlu0 %2568  ;;  %v2579_v4 = vpop.xlane.xlu1 %2578 }
 0x462   : > { %2772 = vst.msk [vmem:[%s3916_s18 + $0x1a8] sm:$0xff] %vm2718_vm3, %v2569_v2  ;;  %2777 = vst.msk [vmem:[%s3916_s18 + $0x1d0] sm:$0xff] %vm2718_vm3, %v2579_v4 }
 0x465   : > { %v2705_v6 = vpop.xlane.xlu0 %2704  ;;  %v2575_v3 = vpop.xlane.xlu1 %2574 }
 0x466   : > { %2840 = vst.msk [vmem:[%s3916_s18 + $0x3c8] sm:$0xff] %vm2718_vm3, %v2705_v6  ;;  %2775 = vst.msk [vmem:[%s3916_s18 + $0x1c0] sm:$0xff] %vm2718_vm3, %v2575_v3 }
 0x469   : > { %v2711_v7 = vpop.xlane.xlu1 %2710  ;;  %v2581_v8 = vpop.xlane.xlu0 %2580 }
 0x46a   : > { %2843 = vst.msk [vmem:[%s3916_s18 + $0x3e0] sm:$0xff] %vm2718_vm3, %v2711_v7  ;;  %2778 = vst.msk [vmem:[%s3916_s18 + $0x1d8] sm:$0xff] %vm2718_vm3, %v2581_v8 }
 0x46d   : > { %v2577_v10 = vpop.xlane.xlu0 %2576  ;;  %v2587_v12 = vpop.xlane.xlu1 %2586 }
 0x46e   : > { %2776 = vst.msk [vmem:[%s3916_s18 + $0x1c8] sm:$0xff] %vm2718_vm3, %v2577_v10  ;;  %2781 = vst.msk [vmem:[%s3916_s18 + $0x1f0] sm:$0xff] %vm2718_vm3, %v2587_v12 }
 0x471   : > { %v2713_v11 = vpop.xlane.xlu0 %2712  ;;  %v2583_v9 = vpop.xlane.xlu1 %2582 }
 0x472   : > { %2844 = vst.msk [vmem:[%s3916_s18 + $0x3e8] sm:$0xff] %vm2718_vm3, %v2713_v11  ;;  %2779 = vst.msk [vmem:[%s3916_s18 + $0x1e0] sm:$0xff] %vm2718_vm3, %v2583_v9 }
 0x475   : > { %v2589_v13 = vpop.xlane.xlu0 %2588  ;;  %v2595_v5 = vpop.xlane.xlu1 %2594 }
 0x476   : > { %2782 = vst.msk [vmem:[%s3916_s18 + $0x1f8] sm:$0xff] %vm2718_vm3, %v2589_v13  ;;  %2785 = vst.msk [vmem:[%s3916_s18 + $0x210] sm:$0xff] %vm2718_vm3, %v2595_v5 }
 0x479   : > { %v2585_v14 = vpop.xlane.xlu0 %2584  ;;  %v2591_v16 = vpop.xlane.xlu1 %2590 }
 0x47a   : > { %2780 = vst.msk [vmem:[%s3916_s18 + $0x1e8] sm:$0xff] %vm2718_vm3, %v2585_v14  ;;  %2783 = vst.msk [vmem:[%s3916_s18 + $0x200] sm:$0xff] %vm2718_vm3, %v2591_v16 }
 0x47d   : > { %v2715_v15 = vpop.xlane.xlu1 %2714  ;;  %v2597_v17 = vpop.xlane.xlu0 %2596 }
 0x47e   : > { %2845 = vst.msk [vmem:[%s3916_s18 + $0x3f0] sm:$0xff] %vm2718_vm3, %v2715_v15  ;;  %2786 = vst.msk [vmem:[%s3916_s18 + $0x218] sm:$0xff] %vm2718_vm3, %v2597_v17 }
 0x481   : > { %v2593_v18 = vpop.xlane.xlu0 %2592 }
 0x482   : > { %2784 = vst.msk [vmem:[%s3916_s18 + $0x208] sm:$0xff] %vm2718_vm3, %v2593_v18 }
 0x485   : > { %v2717_v19 = vpop.xlane.xlu0 %2716 }
 0x486   : > { %2846 = vst.msk [vmem:[%s3916_s18 + $0x3f8] sm:$0xff] %vm2718_vm3, %v2717_v19 }
 0x487 PF: > { %s17_s23 = sadd.s32 1, %s3481_s23   ;;  %s4260_s21 = smov %s3477_s22 }
 0x488   : > { %p14_p4 = scmp.ge.s32.totalorder %s17_s23, 4   ;;  %s4261_s22 = smov %s4263_s25 }
 0x48a   :  { %16 = sbr.rel (!%p14_p4) target bundleno = 2 (0x2), region = 87 }
 0x491   :  { %2868 = vsyncpa [#allocation4], 1 }
 0x492   :  { %2870 = vsyncpa [#allocation4 + $0x1], 1 }

</bundles_post_ra>
